<compile_context>
chip_gen: v7x
topology: tpu7x:2x2x1
jax: 0.10.0
libtpu: 0.0.40
codegen_flags: <defaults>
</compile_context>

<pallas_src>
import jax
import jax.numpy as jnp
from jax.experimental import pallas as pl
from jax.experimental.pallas import tpu as pltpu


BATCH_ALIGN = 16           # batch-tile alignment (safe for bf16 sublane packing + f32 tiles)
MAX_TILE_B = 2048          # upper bound on rows per grid step (amortizes ~0.35us/step)


def _round_up(n, m):
    return ((n + m - 1) // m) * m


def _num_tensorcores_per_chip():
    """v7x has 2 TensorCores per chip; v5e/v6e have 1 (conservative default: 1)."""
    try:
        kind = jax.devices()[0].device_kind.lower()
        if "v7" in kind:
            return 2
    except Exception:
        pass
    return 1


def _vmem_capacity_bytes():
    try:
        return int(pltpu.get_tpu_info().vmem_capacity_bytes)
    except Exception:
        return 64 << 20   # v7x per-TC VMEM — the tightest budget across generations


def _vmem_estimate(tb, f_in, layer_dims, out_size, x_itemsize, param_itemsize,
                   single_buffer_params):
    """Rough per-step VMEM footprint of the fused kernel (bytes)."""
    est = 2 * tb * f_in * x_itemsize            # double-buffered x tile
    est += 2 * tb * out_size * 4                # double-buffered output tile (f32)
    mult = 1 if single_buffer_params else 2
    for di, do in layer_dims:                   # resident weights + biases
        est += mult * (di * do * param_itemsize + do * 4)
    widest = max(do for _, do in layer_dims)
    est += tb * widest * (4 + param_itemsize)   # live f32 accumulator + packed activation
    return est


def _pick_tile_b(batch, num_tc, max_tile=MAX_TILE_B):
    """Pick the batch tile: one step per TensorCore when possible, capped at max_tile."""
    b_al = _round_up(max(batch, 1), BATCH_ALIGN)
    tb = min(_round_up(pl.cdiv(b_al, num_tc), BATCH_ALIGN),
             _round_up(max_tile, BATCH_ALIGN))
    # Keep the grid length a multiple of the TensorCore count so no core idles (v7x).
    nsteps = _round_up(pl.cdiv(b_al, tb), num_tc)
    tb = _round_up(pl.cdiv(b_al, nsteps), BATCH_ALIGN)
    return max(tb, BATCH_ALIGN)


def _make_mlp_kernel(num_layers, compute_dtype):
    """Fused MLP: all Linear(+ReLU) layers for one batch tile, entirely in VMEM/vregs."""

    def kernel(x_ref, *refs):
        out_ref = refs[-1]
        params = refs[:-1]                       # interleaved: w0, b0, w1, b1, ...
        # In-kernel cast (VPU) — no separate XLA pad/cast pass over the batch in HBM.
        h = x_ref[...].astype(compute_dtype)
        for li in range(num_layers):
            w = params[2 * li][...]              # (in_li, out_li)  compute_dtype
            b = params[2 * li + 1][...]          # (1, out_li)      float32
            acc = jnp.dot(h, w, preferred_element_type=jnp.float32) + b
            if li < num_layers - 1:
                # ReLU on the f32 accumulator; re-pack for the next MXU pass.
                h = jnp.maximum(acc, 0.0).astype(compute_dtype)
            else:
                out_ref[...] = acc.astype(out_ref.dtype)

    return kernel


def dag_mlp_forward(x, weights, biases, *, compute_dtype=jnp.bfloat16,
                    max_tile_b=MAX_TILE_B):
    """Fused DAGMLP forward: y = Linear(...ReLU(Linear(x))...).

    x:       (B, in_size + cond_in) float32
    weights: list of (in_li, out_li) arrays (already transposed from torch's (out, in))
    biases:  list of (out_li,) arrays
    """
    num_layers = len(weights)
    B, f_in = x.shape
    out_size = weights[-1].shape[1]
    layer_dims = [tuple(w.shape) for w in weights]

    # Tiny one-shot param casts (weights bf16 for the MXU, biases f32 row vectors).
    w_c = [w.astype(compute_dtype) for w in weights]
    b_c = [b.astype(jnp.float32).reshape(1, -1) for b in biases]
    param_itemsize = jnp.dtype(compute_dtype).itemsize
    x_itemsize = x.dtype.itemsize

    # --- generation-aware batch tile + VMEM budget ---
    num_tc = _num_tensorcores_per_chip()
    budget = _vmem_capacity_bytes() // 2
    tb = _pick_tile_b(B, num_tc, max_tile_b)
    while tb > BATCH_ALIGN and _vmem_estimate(
            tb, f_in, layer_dims, out_size, x_itemsize, param_itemsize, True) > budget:
        tb = _round_up(tb // 2, BATCH_ALIGN)

    b_padded = _round_up(B, tb)
    x_in = x if b_padded == B else jnp.pad(x, ((0, b_padded - B), (0, 0)))
    grid = (b_padded // tb,)

    est = _vmem_estimate(tb, f_in, layer_dims, out_size, x_itemsize, param_itemsize, True)
    vmem_limit = None
    if est > (16 << 20):      # only raise the scoped limit when the default could bind
        vmem_limit = int(min(budget, max(32 << 20, est * 5 // 4)))

    # Advisory cost hint for XLA's scheduler around this (tiny) custom call.
    flops = sum(2 * b_padded * di * do for di, do in layer_dims)
    bytes_accessed = (b_padded * f_in * x_itemsize
                      + sum(di * do * param_itemsize + do * 4 for di, do in layer_dims)
                      + b_padded * out_size * x_itemsize)
    cost = pl.CostEstimate(flops=flops, transcendentals=0, bytes_accessed=bytes_accessed)

    kernel = _make_mlp_kernel(num_layers, compute_dtype)

    def _call(single_buffer_params):
        # x is pipelined over the batch grid; weights/biases have constant block indices,
        # so they are effectively VMEM-resident across grid steps.
        in_specs = [pl.BlockSpec((tb, f_in), lambda i: (i, 0))]
        for w, b in zip(w_c, b_c):
            if single_buffer_params:
                in_specs.append(pl.BlockSpec(w.shape, lambda i: (0, 0),
                                             pipeline_mode=pl.Buffered(1)))
                in_specs.append(pl.BlockSpec(b.shape, lambda i: (0, 0),
                                             pipeline_mode=pl.Buffered(1)))
            else:
                in_specs.append(pl.BlockSpec(w.shape, lambda i: (0, 0)))
                in_specs.append(pl.BlockSpec(b.shape, lambda i: (0, 0)))
        out_spec = pl.BlockSpec((tb, out_size), lambda i: (i, 0))

        fn = pl.pallas_call(
            kernel,
            out_shape=jax.ShapeDtypeStruct((b_padded, out_size), x.dtype),
            grid_spec=pltpu.PrefetchScalarGridSpec(
                num_scalar_prefetch=0,
                grid=grid,
                in_specs=in_specs,
                out_specs=out_spec,
            ),
            compiler_params=pltpu.CompilerParams(
                # Batch tiles are independent -> shard across v7x's two TensorCores.
                dimension_semantics=("parallel",),
                vmem_limit_bytes=vmem_limit,
            ),
            cost_estimate=cost,
        )
        args = [x_in]
        for w, b in zip(w_c, b_c):
            args += [w, b]
        return fn(*args)

    try:
        y = jax.block_until_ready(_call(single_buffer_params=True))
    except Exception:
        # Fallback if this Pallas build rejects single-buffered (Buffered(1)) BlockSpecs.
        y = jax.block_until_ready(_call(single_buffer_params=False))

    # Padded batch rows (if any) carry bias-propagated values -> slice them off.
    return y if b_padded == B else y[:B]


# ---------------------------------------------------------------------------
# Parameter init + references
# ---------------------------------------------------------------------------

def init_dag_mlp_params(key, in_size, hidden, out_size, cond_in=0):
    """Deterministic synthetic params matching nn.Linear shapes (stored as (in, out))."""
    l1 = [in_size + cond_in] + hidden
    l2 = hidden + [out_size]
    weights, biases = [], []
    for h1, h2 in zip(l1, l2):
        key, kw, kb = jax.random.split(key, 3)
        bound = 1.0 / jnp.sqrt(h1)
        w = jax.random.uniform(kw, (h1, h2), jnp.float32, -bound, bound)  # torch (out,in) transposed
        b = jax.random.uniform(kb, (h2,), jnp.float32, -bound, bound)
        weights.append(w)
        biases.append(b)
    return weights, biases


def dag_mlp_reference(x, weights, biases):
    """Pure-JAX f32 reference mirroring nn.Sequential(Linear, ReLU, ..., Linear)."""
    h = x
    n = len(weights)
    for li, (w, b) in enumerate(zip(weights, biases)):
        h = h @ w + b
        if li < n - 1:
            h = jnp.maximum(h, 0.0)
    return h


def dag_mlp_reference_bf16(x, weights, biases):
    """Reference with the kernel's exact numerics: bf16 operands, f32 accumulation."""
    h = x.astype(jnp.bfloat16)
    n = len(weights)
    for li, (w, b) in enumerate(zip(weights, biases)):
        acc = jnp.dot(h, w.astype(jnp.bfloat16),
                      preferred_element_type=jnp.float32) + b
        if li < n - 1:
            h = jnp.maximum(acc, 0.0).astype(jnp.bfloat16)
        else:
            h = acc
    return h.astype(x.dtype)


if __name__ == "__main__":
    # DAGMLP(in_size=16, hidden=[32, 32], out_size=8); batch=512 gives
    #   grid=(1,) on v5e/v6e (single TensorCore) and grid=(2,) on v7x (both cores busy).
    in_size, hidden, out_size, cond_in = 16, [32, 32], 8, 0
    batch = 512

    key = jax.random.PRNGKey(0)
    key, kx = jax.random.split(key)
    x = jax.random.normal(kx, (batch, in_size + cond_in), jnp.float32)

    weights, biases = init_dag_mlp_params(key, in_size, hidden, out_size, cond_in)

    out = dag_mlp_forward(x, weights, biases)
    out = jax.block_until_ready(out)
    assert out.shape == (batch, out_size), out.shape

    # Tight check vs a reference using identical bf16-operand / f32-accum math.
    ref_bf16 = dag_mlp_reference_bf16(x, weights, biases)
    assert jnp.allclose(out, ref_bf16, atol=1e-3, rtol=1e-3), "mismatch vs bf16 reference"

    # Loose check vs the full-f32 reference (difference is bf16 quantization noise only).
    ref_f32 = dag_mlp_reference(x, weights, biases)
    assert jnp.allclose(out, ref_f32, atol=1e-1, rtol=1e-1), "mismatch vs f32 reference"

    print("KERNEL_OK")
</pallas_src>

<mosaic_0001>
module attributes {stable_mosaic.version = 11 : i64} {
  func.func @kernel(%arg0: i32, %arg1: memref<512x16xf32, #tpu.memory_space<vmem>>, %arg2: memref<16x32xbf16, #tpu.memory_space<vmem>>, %arg3: memref<1x32xf32, #tpu.memory_space<vmem>>, %arg4: memref<32x32xbf16, #tpu.memory_space<vmem>>, %arg5: memref<1x32xf32, #tpu.memory_space<vmem>>, %arg6: memref<32x8xbf16, #tpu.memory_space<vmem>>, %arg7: memref<1x8xf32, #tpu.memory_space<vmem>>, %arg8: memref<512x8xf32, #tpu.memory_space<vmem>>) attributes {dimension_semantics = [#tpu.dimension_semantics<parallel>], iteration_bounds = array<i64: 1>, scalar_prefetch = 0 : i64, scratch_operands = 0 : i64, tpu.core_type = #tpu.core_type<tc>, window_params = [{transform_indices = @transform_0, window_bounds = array<i64: 512, 16>}, {pipeline_mode = #tpu.pipeline_mode<synchronous>, transform_indices = @transform_1, window_bounds = array<i64: 16, 32>}, {pipeline_mode = #tpu.pipeline_mode<synchronous>, transform_indices = @transform_2, window_bounds = array<i64: 1, 32>}, {pipeline_mode = #tpu.pipeline_mode<synchronous>, transform_indices = @transform_3, window_bounds = array<i64: 32, 32>}, {pipeline_mode = #tpu.pipeline_mode<synchronous>, transform_indices = @transform_4, window_bounds = array<i64: 1, 32>}, {pipeline_mode = #tpu.pipeline_mode<synchronous>, transform_indices = @transform_5, window_bounds = array<i64: 32, 8>}, {pipeline_mode = #tpu.pipeline_mode<synchronous>, transform_indices = @transform_6, window_bounds = array<i64: 1, 8>}, {transform_indices = @transform_7, window_bounds = array<i64: 512, 8>}]} {
    %c0 = arith.constant 0 : index
    %c0_0 = arith.constant 0 : index
    %0 = vector.load %arg1[%c0, %c0_0] : memref<512x16xf32, #tpu.memory_space<vmem>>, vector<512x16xf32>
    %1 = arith.truncf %0 : vector<512x16xf32> to vector<512x16xbf16>
    %c0_1 = arith.constant 0 : index
    %c0_2 = arith.constant 0 : index
    %2 = vector.load %arg2[%c0_1, %c0_2] : memref<16x32xbf16, #tpu.memory_space<vmem>>, vector<16x32xbf16>
    %c0_3 = arith.constant 0 : index
    %c0_4 = arith.constant 0 : index
    %3 = vector.load %arg3[%c0_3, %c0_4] : memref<1x32xf32, #tpu.memory_space<vmem>>, vector<1x32xf32>
    %cst = arith.constant dense<0.000000e+00> : vector<512x32xf32>
    %4 = tpu.matmul %1, %2, %cst {dimension_numbers = #tpu.dot_dimension_numbers<[1], [0], [0], [1], [0, 0, 1, 1], [], []>} : vector<512x16xbf16>, vector<16x32xbf16>, vector<512x32xf32> -> vector<512x32xf32>
    %5 = vector.broadcast %3 : vector<1x32xf32> to vector<512x32xf32>
    %6 = arith.addf %4, %5 : vector<512x32xf32>
    %cst_5 = arith.constant 0.000000e+00 : f32
    %7 = vector.broadcast %cst_5 : f32 to vector<512x32xf32>
    %8 = arith.maximumf %6, %7 : vector<512x32xf32>
    %9 = arith.truncf %8 : vector<512x32xf32> to vector<512x32xbf16>
    %c0_6 = arith.constant 0 : index
    %c0_7 = arith.constant 0 : index
    %10 = vector.load %arg4[%c0_6, %c0_7] : memref<32x32xbf16, #tpu.memory_space<vmem>>, vector<32x32xbf16>
    %c0_8 = arith.constant 0 : index
    %c0_9 = arith.constant 0 : index
    %11 = vector.load %arg5[%c0_8, %c0_9] : memref<1x32xf32, #tpu.memory_space<vmem>>, vector<1x32xf32>
    %cst_10 = arith.constant dense<0.000000e+00> : vector<512x32xf32>
    %12 = tpu.matmul %9, %10, %cst_10 {dimension_numbers = #tpu.dot_dimension_numbers<[1], [0], [0], [1], [0, 0, 1, 1], [], []>} : vector<512x32xbf16>, vector<32x32xbf16>, vector<512x32xf32> -> vector<512x32xf32>
    %13 = vector.broadcast %11 : vector<1x32xf32> to vector<512x32xf32>
    %14 = arith.addf %12, %13 : vector<512x32xf32>
    %cst_11 = arith.constant 0.000000e+00 : f32
    %15 = vector.broadcast %cst_11 : f32 to vector<512x32xf32>
    %16 = arith.maximumf %14, %15 : vector<512x32xf32>
    %17 = arith.truncf %16 : vector<512x32xf32> to vector<512x32xbf16>
    %c0_12 = arith.constant 0 : index
    %c0_13 = arith.constant 0 : index
    %18 = vector.load %arg6[%c0_12, %c0_13] : memref<32x8xbf16, #tpu.memory_space<vmem>>, vector<32x8xbf16>
    %c0_14 = arith.constant 0 : index
    %c0_15 = arith.constant 0 : index
    %19 = vector.load %arg7[%c0_14, %c0_15] : memref<1x8xf32, #tpu.memory_space<vmem>>, vector<1x8xf32>
    %cst_16 = arith.constant dense<0.000000e+00> : vector<512x8xf32>
    %20 = tpu.matmul %17, %18, %cst_16 {dimension_numbers = #tpu.dot_dimension_numbers<[1], [0], [0], [1], [0, 0, 1, 1], [], []>} : vector<512x32xbf16>, vector<32x8xbf16>, vector<512x8xf32> -> vector<512x8xf32>
    %21 = vector.broadcast %19 : vector<1x8xf32> to vector<512x8xf32>
    %22 = arith.addf %20, %21 : vector<512x8xf32>
    %c0_17 = arith.constant 0 : index
    %c0_18 = arith.constant 0 : index
    %23 = vector.load %arg8[%c0_17, %c0_18] : memref<512x8xf32, #tpu.memory_space<vmem>>, vector<512x8xf32>
    tpu.vector_store %arg8[%c0_17, %c0_18], %22 {strides = array<i32>} : memref<512x8xf32, #tpu.memory_space<vmem>>, vector<512x8xf32>,
    return
  }
  func.func @transform_0(%arg0: i32) -> (i32, i32) {
    %c0_i32 = arith.constant 0 : i32
    %c0_i32_0 = arith.constant 0 : i32
    return %arg0, %c0_i32 : i32, i32
  }
  func.func @transform_1(%arg0: i32) -> (i32, i32) {
    %c0_i32 = arith.constant 0 : i32
    %c0_i32_0 = arith.constant 0 : i32
    %c0_i32_1 = arith.constant 0 : i32
    return %c0_i32, %c0_i32_0 : i32, i32
  }
  func.func @transform_2(%arg0: i32) -> (i32, i32) {
    %c0_i32 = arith.constant 0 : i32
    %c0_i32_0 = arith.constant 0 : i32
    %c0_i32_1 = arith.constant 0 : i32
    return %c0_i32, %c0_i32_0 : i32, i32
  }
  func.func @transform_3(%arg0: i32) -> (i32, i32) {
    %c0_i32 = arith.constant 0 : i32
    %c0_i32_0 = arith.constant 0 : i32
    %c0_i32_1 = arith.constant 0 : i32
    return %c0_i32, %c0_i32_0 : i32, i32
  }
  func.func @transform_4(%arg0: i32) -> (i32, i32) {
    %c0_i32 = arith.constant 0 : i32
    %c0_i32_0 = arith.constant 0 : i32
    %c0_i32_1 = arith.constant 0 : i32
    return %c0_i32, %c0_i32_0 : i32, i32
  }
  func.func @transform_5(%arg0: i32) -> (i32, i32) {
    %c0_i32 = arith.constant 0 : i32
    %c0_i32_0 = arith.constant 0 : i32
    %c0_i32_1 = arith.constant 0 : i32
    return %c0_i32, %c0_i32_0 : i32, i32
  }
  func.func @transform_6(%arg0: i32) -> (i32, i32) {
    %c0_i32 = arith.constant 0 : i32
    %c0_i32_0 = arith.constant 0 : i32
    %c0_i32_1 = arith.constant 0 : i32
    return %c0_i32, %c0_i32_0 : i32, i32
  }
  func.func @transform_7(%arg0: i32) -> (i32, i32) {
    %c0_i32 = arith.constant 0 : i32
    %c0_i32_0 = arith.constant 0 : i32
    return %arg0, %c0_i32 : i32, i32
  }
}

module attributes {stable_mosaic.version = 11 : i64} {
  func.func @kernel(%arg0: i32, %arg1: memref<512x16xf32, #tpu.memory_space<vmem>>, %arg2: memref<16x32xbf16, #tpu.memory_space<vmem>>, %arg3: memref<1x32xf32, #tpu.memory_space<vmem>>, %arg4: memref<32x32xbf16, #tpu.memory_space<vmem>>, %arg5: memref<1x32xf32, #tpu.memory_space<vmem>>, %arg6: memref<32x8xbf16, #tpu.memory_space<vmem>>, %arg7: memref<1x8xf32, #tpu.memory_space<vmem>>, %arg8: memref<512x8xf32, #tpu.memory_space<vmem>>) attributes {dimension_semantics = [#tpu.dimension_semantics<parallel>], iteration_bounds = array<i64: 1>, scalar_prefetch = 0 : i64, scratch_operands = 0 : i64, tpu.core_type = #tpu.core_type<tc>, window_params = [{transform_indices = @transform_0, window_bounds = array<i64: 512, 16>}, {pipeline_mode = #tpu.pipeline_mode<synchronous>, transform_indices = @transform_1, window_bounds = array<i64: 16, 32>}, {pipeline_mode = #tpu.pipeline_mode<synchronous>, transform_indices = @transform_2, window_bounds = array<i64: 1, 32>}, {pipeline_mode = #tpu.pipeline_mode<synchronous>, transform_indices = @transform_3, window_bounds = array<i64: 32, 32>}, {pipeline_mode = #tpu.pipeline_mode<synchronous>, transform_indices = @transform_4, window_bounds = array<i64: 1, 32>}, {pipeline_mode = #tpu.pipeline_mode<synchronous>, transform_indices = @transform_5, window_bounds = array<i64: 32, 8>}, {pipeline_mode = #tpu.pipeline_mode<synchronous>, transform_indices = @transform_6, window_bounds = array<i64: 1, 8>}, {transform_indices = @transform_7, window_bounds = array<i64: 512, 8>}]} {
    %c0 = arith.constant 0 : index
    %c0_0 = arith.constant 0 : index
    %0 = vector.load %arg1[%c0, %c0_0] : memref<512x16xf32, #tpu.memory_space<vmem>>, vector<512x16xf32>
    %1 = arith.truncf %0 : vector<512x16xf32> to vector<512x16xbf16>
    %c0_1 = arith.constant 0 : index
    %c0_2 = arith.constant 0 : index
    %2 = vector.load %arg2[%c0_1, %c0_2] : memref<16x32xbf16, #tpu.memory_space<vmem>>, vector<16x32xbf16>
    %c0_3 = arith.constant 0 : index
    %c0_4 = arith.constant 0 : index
    %3 = vector.load %arg3[%c0_3, %c0_4] : memref<1x32xf32, #tpu.memory_space<vmem>>, vector<1x32xf32>
    %cst = arith.constant dense<0.000000e+00> : vector<512x32xf32>
    %4 = tpu.matmul %1, %2, %cst {dimension_numbers = #tpu.dot_dimension_numbers<[1], [0], [0], [1], [0, 0, 1, 1], [], []>} : vector<512x16xbf16>, vector<16x32xbf16>, vector<512x32xf32> -> vector<512x32xf32>
    %5 = vector.broadcast %3 : vector<1x32xf32> to vector<512x32xf32>
    %6 = arith.addf %4, %5 : vector<512x32xf32>
    %cst_5 = arith.constant 0.000000e+00 : f32
    %7 = vector.broadcast %cst_5 : f32 to vector<512x32xf32>
    %8 = arith.maximumf %6, %7 : vector<512x32xf32>
    %9 = arith.truncf %8 : vector<512x32xf32> to vector<512x32xbf16>
    %c0_6 = arith.constant 0 : index
    %c0_7 = arith.constant 0 : index
    %10 = vector.load %arg4[%c0_6, %c0_7] : memref<32x32xbf16, #tpu.memory_space<vmem>>, vector<32x32xbf16>
    %c0_8 = arith.constant 0 : index
    %c0_9 = arith.constant 0 : index
    %11 = vector.load %arg5[%c0_8, %c0_9] : memref<1x32xf32, #tpu.memory_space<vmem>>, vector<1x32xf32>
    %cst_10 = arith.constant dense<0.000000e+00> : vector<512x32xf32>
    %12 = tpu.matmul %9, %10, %cst_10 {dimension_numbers = #tpu.dot_dimension_numbers<[1], [0], [0], [1], [0, 0, 1, 1], [], []>} : vector<512x32xbf16>, vector<32x32xbf16>, vector<512x32xf32> -> vector<512x32xf32>
    %13 = vector.broadcast %11 : vector<1x32xf32> to vector<512x32xf32>
    %14 = arith.addf %12, %13 : vector<512x32xf32>
    %cst_11 = arith.constant 0.000000e+00 : f32
    %15 = vector.broadcast %cst_11 : f32 to vector<512x32xf32>
    %16 = arith.maximumf %14, %15 : vector<512x32xf32>
    %17 = arith.truncf %16 : vector<512x32xf32> to vector<512x32xbf16>
    %c0_12 = arith.constant 0 : index
    %c0_13 = arith.constant 0 : index
    %18 = vector.load %arg6[%c0_12, %c0_13] : memref<32x8xbf16, #tpu.memory_space<vmem>>, vector<32x8xbf16>
    %c0_14 = arith.constant 0 : index
    %c0_15 = arith.constant 0 : index
    %19 = vector.load %arg7[%c0_14, %c0_15] : memref<1x8xf32, #tpu.memory_space<vmem>>, vector<1x8xf32>
    %cst_16 = arith.constant dense<0.000000e+00> : vector<512x8xf32>
    %20 = tpu.matmul %17, %18, %cst_16 {dimension_numbers = #tpu.dot_dimension_numbers<[1], [0], [0], [1], [0, 0, 1, 1], [], []>} : vector<512x32xbf16>, vector<32x8xbf16>, vector<512x8xf32> -> vector<512x8xf32>
    %21 = vector.broadcast %19 : vector<1x8xf32> to vector<512x8xf32>
    %22 = arith.addf %20, %21 : vector<512x8xf32>
    %c0_17 = arith.constant 0 : index
    %c0_18 = arith.constant 0 : index
    %23 = vector.load %arg8[%c0_17, %c0_18] : memref<512x8xf32, #tpu.memory_space<vmem>>, vector<512x8xf32>
    tpu.vector_store %arg8[%c0_17, %c0_18], %22 {strides = array<i32>} : memref<512x8xf32, #tpu.memory_space<vmem>>, vector<512x8xf32>,
    return
  }
  func.func @transform_0(%arg0: i32) -> (i32, i32) {
    %c0_i32 = arith.constant 0 : i32
    %c0_i32_0 = arith.constant 0 : i32
    return %arg0, %c0_i32 : i32, i32
  }
  func.func @transform_1(%arg0: i32) -> (i32, i32) {
    %c0_i32 = arith.constant 0 : i32
    %c0_i32_0 = arith.constant 0 : i32
    %c0_i32_1 = arith.constant 0 : i32
    return %c0_i32, %c0_i32_0 : i32, i32
  }
  func.func @transform_2(%arg0: i32) -> (i32, i32) {
    %c0_i32 = arith.constant 0 : i32
    %c0_i32_0 = arith.constant 0 : i32
    %c0_i32_1 = arith.constant 0 : i32
    return %c0_i32, %c0_i32_0 : i32, i32
  }
  func.func @transform_3(%arg0: i32) -> (i32, i32) {
    %c0_i32 = arith.constant 0 : i32
    %c0_i32_0 = arith.constant 0 : i32
    %c0_i32_1 = arith.constant 0 : i32
    return %c0_i32, %c0_i32_0 : i32, i32
  }
  func.func @transform_4(%arg0: i32) -> (i32, i32) {
    %c0_i32 = arith.constant 0 : i32
    %c0_i32_0 = arith.constant 0 : i32
    %c0_i32_1 = arith.constant 0 : i32
    return %c0_i32, %c0_i32_0 : i32, i32
  }
  func.func @transform_5(%arg0: i32) -> (i32, i32) {
    %c0_i32 = arith.constant 0 : i32
    %c0_i32_0 = arith.constant 0 : i32
    %c0_i32_1 = arith.constant 0 : i32
    return %c0_i32, %c0_i32_0 : i32, i32
  }
  func.func @transform_6(%arg0: i32) -> (i32, i32) {
    %c0_i32 = arith.constant 0 : i32
    %c0_i32_0 = arith.constant 0 : i32
    %c0_i32_1 = arith.constant 0 : i32
    return %c0_i32, %c0_i32_0 : i32, i32
  }
  func.func @transform_7(%arg0: i32) -> (i32, i32) {
    %c0_i32 = arith.constant 0 : i32
    %c0_i32_0 = arith.constant 0 : i32
    return %arg0, %c0_i32 : i32, i32
  }
}

</mosaic_0001>

<bundles_post_ra>
// kernel: tpu_custom_call.1
= control target key start
LH: loop header
LB: loop body
LE: loop exit
PB: predicated region body
PF: predicated region fallthrough
CT: control target
= control target key end

     0   :  { %vm138_vm0 = vcmask 130048   ;;  %vm643_vm1 = vcmask 261120   ;;  %vm1533_vm2 = vcmask 64512   ;;  %s2852_s1 = inlined_call_operand.vmem [shape: bf16[16,32], index: 1, kind: input, shape index: {}]   ;;  %s2853_s0 = inlined_call_operand.vmem [shape: f32[512,16], index: 0, kind: input, shape index: {}]   ;;  %s2854_s3 = inlined_call_operand.vmem [shape: bf16[32,32], index: 3, kind: input, shape index: {}]   ;;  %s2855_s2 = inlined_call_operand.vmem [shape: f32[1,32], index: 2, kind: input, shape index: {}]   ;;  %s2856_s5 = inlined_call_operand.vmem [shape: bf16[32,8], index: 5, kind: input, shape index: {}]   ;;  %s2857_s4 = inlined_call_operand.vmem [shape: f32[1,32], index: 4, kind: input, shape index: {}]   ;;  %s2858_s6 = inlined_call_operand.vmem [shape: f32[1,8], index: 6, kind: input, shape index: {}]   ;;  %s2859_s7 = inlined_call_operand.vmem [shape: f32[512,8], index: 7, kind: output, shape index: {}]  }
   0x1   :  { %v2011_v0 = vld [vmem:[%s2852_s1] sm:$0xff]   ;;  %v28_v2 = vld [vmem:[%s2853_s0 + $0x8] sm:$0xff]  ;;  %v29_v3 = vld [vmem:[%s2853_s0 + $0x10] sm:$0xff] }
   0x2   :  { %v27_v1 = vld [vmem:[%s2853_s0] sm:$0xff]  ;;  %1807 = vmatprep.subr.bf16.mxu0 %v2011_v0  ;;  %v30_v5 = vld [vmem:[%s2853_s0 + $0x18] sm:$0xff]  ;;  %v32_v7 = vld [vmem:[%s2853_s0 + $0x28] sm:$0xff]  ;;  %2009 = vmatprep.subr.bf16.mxu1 %v2011_v0 }
   0x3   :  { %v91_v4 = vpack.c.bf16 %v28_v2, %v27_v1  ;;  %v31_v6 = vld [vmem:[%s2853_s0 + $0x20] sm:$0xff]  ;;  %1808 = vmatpush3.bf16.msra.mxu0 %v2011_v0  ;;  %v92_v8 = vpack.c.bf16 %v30_v5, %v29_v3  ;;  %2010 = vmatpush3.bf16.msra.mxu1 %v2011_v0  ;;  %v33_v10 = vld [vmem:[%s2853_s0 + $0x30] sm:$0xff]  ;;  %v34_v11 = vld [vmem:[%s2853_s0 + $0x38] sm:$0xff] }
   0x4   :  { %v93_v9 = vpack.c.bf16 %v32_v7, %v31_v6  ;;  %v35_v12 = vld [vmem:[%s2853_s0 + $0x40] sm:$0xff]  ;;  %v36_v13 = vld [vmem:[%s2853_s0 + $0x48] sm:$0xff]  ;;  %v94_v14 = vpack.c.bf16 %v34_v11, %v33_v10  ;;  %v61_v18 = vld [vmem:[%s2853_s0 + $0x110] sm:$0xff] }
   0x5   :  { %1809 = vmatprep.mubr.msk.bf16.mxu0 %vm138_vm0, %v91_v4  ;;  %v95_v15 = vpack.c.bf16 %v36_v13, %v35_v12  ;;  %v59_v16 = vld [vmem:[%s2853_s0 + $0x100] sm:$0xff]  ;;  %v60_v17 = vld [vmem:[%s2853_s0 + $0x108] sm:$0xff]  ;;  %v62_v19 = vld [vmem:[%s2853_s0 + $0x118] sm:$0xff] }
   0x6   :  { %1810 = vmatmul.mubr.msk.bf16.vlgmr.msra.gmra.mrb[0].mxu0 %vm138_vm0, %v92_v8  ;;  %v107_v20 = vpack.c.bf16 %v60_v17, %v59_v16  ;;  %v108_v21 = vpack.c.bf16 %v62_v19, %v61_v18  ;;  %v63_v22 = vld [vmem:[%s2853_s0 + $0x120] sm:$0xff]  ;;  %v64_v23 = vld [vmem:[%s2853_s0 + $0x128] sm:$0xff]  ;;  %v37_v25 = vld [vmem:[%s2853_s0 + $0x50] sm:$0xff] }
   0x7   :  { %1813 = vmatprep.mubr.msk.bf16.mxu0 %vm138_vm0, %v93_v9  ;;  %v109_v24 = vpack.c.bf16 %v64_v23, %v63_v22  ;;  %v38_v26 = vld [vmem:[%s2853_s0 + $0x58] sm:$0xff]  ;;  %v39_v27 = vld [vmem:[%s2853_s0 + $0x60] sm:$0xff]  ;;  %v40_v28 = vld [vmem:[%s2853_s0 + $0x68] sm:$0xff] }
   0x8   :  { %1841 = vmatprep.mubr.msk.bf16.mxu1 %vm138_vm0, %v107_v20  ;;  %v65_v29 = vld [vmem:[%s2853_s0 + $0x130] sm:$0xff]  ;;  %v66_v30 = vld [vmem:[%s2853_s0 + $0x138] sm:$0xff]  ;;  %v96_v31 = vpack.c.bf16 %v38_v26, %v37_v25  ;;  %v67_v32 = vld [vmem:[%s2853_s0 + $0x140] sm:$0xff]  ;;  %v97_v34 = vpack.c.bf16 %v40_v28, %v39_v27 }
   0x9   :  { %1842 = vmatmul.mubr.msk.bf16.vlgmr.msra.gmra.mrb[0].mxu1 %vm138_vm0, %v108_v21  ;;  %v68_v33 = vld [vmem:[%s2853_s0 + $0x148] sm:$0xff]  ;;  %v110_v35 = vpack.c.bf16 %v66_v30, %v65_v29  ;;  %v41_v36 = vld [vmem:[%s2853_s0 + $0x70] sm:$0xff]  ;;  %v42_v38 = vld [vmem:[%s2853_s0 + $0x78] sm:$0xff] }
   0xa   :  { %1845 = vmatprep.mubr.msk.bf16.mxu1 %vm138_vm0, %v109_v24  ;;  %v111_v37 = vpack.c.bf16 %v68_v33, %v67_v32  ;;  %v2012_v39 = vld [vmem:[%s2854_s3] sm:$0xff]   ;;  %v44_v41 = vld [vmem:[%s2853_s0 + $0x88] sm:$0xff]  ;;  %v69_v43 = vld [vmem:[%s2853_s0 + $0x150] sm:$0xff]  ;;  %v98_v45 = vpack.c.bf16 %v42_v38, %v41_v36 }
   0xb   :  { %v43_v40 = vld [vmem:[%s2853_s0 + $0x80] sm:$0xff]  ;;  %v2013_v42 = vld [vmem:[%s2854_s3 + $0x8] sm:$0xff]   ;;  %v70_v44 = vld [vmem:[%s2853_s0 + $0x158] sm:$0xff]  ;;  %1873 = vmatprep.subr.bf16.mxu1 %v2012_v39 }
   0xc   :  { %v71_v46 = vld [vmem:[%s2853_s0 + $0x160] sm:$0xff]  ;;  %v72_v47 = vld [vmem:[%s2853_s0 + $0x168] sm:$0xff]  ;;  %1874 = vmatpush3.bf16.msra.mxu1 %v2012_v39  ;;  %v99_v48 = vpack.c.bf16 %v44_v41, %v43_v40  ;;  %v112_v49 = vpack.c.bf16 %v70_v44, %v69_v43  ;;  %v45_v51 = vld [vmem:[%s2853_s0 + $0x90] sm:$0xff] }
   0xd   :  { %1875 = vmatprep.subr.bf16.mxu1 %v2013_v42  ;;  %v113_v50 = vpack.c.bf16 %v72_v47, %v71_v46  ;;  %v46_v52 = vld [vmem:[%s2853_s0 + $0x98] sm:$0xff]  ;;  %v47_v53 = vld [vmem:[%s2853_s0 + $0xa0] sm:$0xff]  ;;  %v48_v54 = vld [vmem:[%s2853_s0 + $0xa8] sm:$0xff] }
   0xe   :  { %1814 = vmatmul.mubr.msk.bf16.gmra.mrb[4].mxu0 %vm138_vm0, %v94_v14  ;;  %v73_v55 = vld [vmem:[%s2853_s0 + $0x170] sm:$0xff]  ;;  %v74_v56 = vld [vmem:[%s2853_s0 + $0x178] sm:$0xff]  ;;  %v100_v57 = vpack.c.bf16 %v46_v52, %v45_v51  ;;  %v75_v58 = vld [vmem:[%s2853_s0 + $0x180] sm:$0xff]  ;;  %v101_v60 = vpack.c.bf16 %v48_v54, %v47_v53 }
   0xf   :  { %1817 = vmatprep.mubr.msk.bf16.mxu0 %vm138_vm0, %v95_v15  ;;  %v76_v59 = vld [vmem:[%s2853_s0 + $0x188] sm:$0xff]  ;;  %v114_v61 = vpack.c.bf16 %v74_v56, %v73_v55  ;;  %v49_v63 = vld [vmem:[%s2853_s0 + $0xb0] sm:$0xff]  ;;  %v50_v0 = vld [vmem:[%s2853_s0 + $0xb8] sm:$0xff] }
  0x10   :  { %1876 = vmatpush3.bf16.msra.mxu1 %v2013_v42  ;;  %v115_v62 = vpack.c.bf16 %v76_v59, %v75_v58  ;;  %v51_v1 = vld [vmem:[%s2853_s0 + $0xc0] sm:$0xff]  ;;  %v52_v2 = vld [vmem:[%s2853_s0 + $0xc8] sm:$0xff]  ;;  %v77_v3 = vld [vmem:[%s2853_s0 + $0x190] sm:$0xff]  ;;  %v102_v5 = vpack.c.bf16 %v50_v0, %v49_v63 }
  0x11   :  { %1846 = vmatmul.mubr.msk.bf16.gmra.mrb[4].mxu1 %vm138_vm0, %v110_v35  ;;  %v78_v4 = vld [vmem:[%s2853_s0 + $0x198] sm:$0xff]  ;;  %v79_v6 = vld [vmem:[%s2853_s0 + $0x1a0] sm:$0xff]  ;;  %v80_v7 = vld [vmem:[%s2853_s0 + $0x1a8] sm:$0xff]  ;;  %v103_v8 = vpack.c.bf16 %v52_v2, %v51_v1 }
  0x12   :  { %1849 = vmatprep.mubr.msk.bf16.mxu1 %vm138_vm0, %v111_v37  ;;  %v116_v9 = vpack.c.bf16 %v78_v4, %v77_v3  ;;  %v117_v10 = vpack.c.bf16 %v80_v7, %v79_v6  ;;  %v53_v11 = vld [vmem:[%s2853_s0 + $0xd0] sm:$0xff]  ;;  %v54_v12 = vld [vmem:[%s2853_s0 + $0xd8] sm:$0xff]  ;;  %v55_v13 = vld [vmem:[%s2853_s0 + $0xe0] sm:$0xff] }
  0x13   :  { %v56_v14 = vld [vmem:[%s2853_s0 + $0xe8] sm:$0xff]  ;;  %v81_v15 = vld [vmem:[%s2853_s0 + $0x1b0] sm:$0xff]  ;;  %v82_v16 = vld [vmem:[%s2853_s0 + $0x1b8] sm:$0xff]  ;;  %v104_v17 = vpack.c.bf16 %v54_v12, %v53_v11 }
  0x14   :  { %v83_v18 = vld [vmem:[%s2853_s0 + $0x1c0] sm:$0xff]  ;;  %v84_v19 = vld [vmem:[%s2853_s0 + $0x1c8] sm:$0xff]  ;;  %v105_v20 = vpack.c.bf16 %v56_v14, %v55_v13  ;;  %v118_v21 = vpack.c.bf16 %v82_v16, %v81_v15  ;;  %v57_v23 = vld [vmem:[%s2853_s0 + $0xf0] sm:$0xff] }
  0x15   :  { %v119_v22 = vpack.c.bf16 %v84_v19, %v83_v18  ;;  %v58_v24 = vld [vmem:[%s2853_s0 + $0xf8] sm:$0xff]  ;;  %v85_v25 = vld [vmem:[%s2853_s0 + $0x1d0] sm:$0xff]  ;;  %v87_v28 = vld [vmem:[%s2853_s0 + $0x1e0] sm:$0xff] }
  0x16   :  { %1818 = vmatmul.mubr.msk.bf16.gmra.mrb[8].mxu0 %vm138_vm0, %v96_v31  ;;  %v86_v26 = vld [vmem:[%s2853_s0 + $0x1d8] sm:$0xff]  ;;  %v106_v27 = vpack.c.bf16 %v58_v24, %v57_v23  ;;  %v88_v29 = vld [vmem:[%s2853_s0 + $0x1e8] sm:$0xff]  ;;  %v89_v32 = vld [vmem:[%s2853_s0 + $0x1f0] sm:$0xff] }
  0x17   :  { %1821 = vmatprep.mubr.msk.bf16.mxu0 %vm138_vm0, %v97_v34  ;;  %v120_v30 = vpack.c.bf16 %v86_v26, %v85_v25  ;;  %v121_v31 = vpack.c.bf16 %v88_v29, %v87_v28  ;;  %v90_v33 = vld [vmem:[%s2853_s0 + $0x1f8] sm:$0xff]  ;;  %v2292_v35 = vld [vmem:[%s2855_s2] ss:$0 sm:$0xff]  ;;  %v2015_v47 = vld [vmem:[%s2856_s5 + $0x8] sm:$0xff]  }
  0x18   :  { %v122_v34 = vpack.c.bf16 %v90_v33, %v89_v32 }
  0x19   :  { %1850 = vmatmul.mubr.msk.bf16.gmra.mrb[8].mxu1 %vm138_vm0, %v112_v49 }
  0x1a   :  { %1853 = vmatprep.mubr.msk.bf16.mxu1 %vm138_vm0, %v113_v50 }
  0x1e   :  { %1822 = vmatmul.mubr.msk.bf16.gmra.mrb[12].mxu0 %vm138_vm0, %v98_v45  ;;  %v2014_v45 = vld [vmem:[%s2856_s5] sm:$0xff]  }
  0x1f   :  { %1825 = vmatprep.mubr.msk.bf16.mxu0 %vm138_vm0, %v99_v48  ;;  %1941 = vmatprep.subr.bf16.mxu0 %v2014_v45 }
  0x20   :  { %1942 = vmatpush3.bf16.msra.mxu0 %v2014_v45 }
  0x21   :  { %1854 = vmatmul.mubr.msk.bf16.gmra.mrb[12].mxu1 %vm138_vm0, %v114_v61  ;;  %1943 = vmatprep.subr.bf16.mxu0 %v2015_v47 }
  0x22   :  { %1857 = vmatprep.mubr.msk.bf16.mxu1 %vm138_vm0, %v115_v62 }
  0x24   :  { %1944 = vmatpush3.bf16.msra.mxu0 %v2015_v47 }
  0x26   :  { %1826 = vmatmul.mubr.msk.bf16.gmra.mrb[16].mxu0 %vm138_vm0, %v100_v57 }
  0x27   :  { %1829 = vmatprep.mubr.msk.bf16.mxu0 %vm138_vm0, %v101_v60 }
  0x29   :  { %1858 = vmatmul.mubr.msk.bf16.gmra.mrb[16].mxu1 %vm138_vm0, %v116_v9 }
  0x2a   :  { %1861 = vmatprep.mubr.msk.bf16.mxu1 %vm138_vm0, %v117_v10 }
  0x2e   :  { %1830 = vmatmul.mubr.msk.bf16.gmra.mrb[20].mxu0 %vm138_vm0, %v102_v5 }
  0x2f   :  { %1833 = vmatprep.mubr.msk.bf16.mxu0 %vm138_vm0, %v103_v8 }
  0x31   :  { %1862 = vmatmul.mubr.msk.bf16.gmra.mrb[20].mxu1 %vm138_vm0, %v118_v21 }
  0x32   :  { %1865 = vmatprep.mubr.msk.bf16.mxu1 %vm138_vm0, %v119_v22 }
  0x36   :  { %1834 = vmatmul.mubr.msk.bf16.gmra.mrb[24].mxu0 %vm138_vm0, %v104_v17 }
  0x37   :  { %1837 = vmatprep.mubr.msk.bf16.mxu0 %vm138_vm0, %v105_v20 }
  0x39   :  { %1866 = vmatmul.mubr.msk.bf16.gmra.mrb[24].mxu1 %vm138_vm0, %v120_v30 }
  0x3a   :  { %1869 = vmatprep.mubr.msk.bf16.mxu1 %vm138_vm0, %v121_v31 }
  0x3e   :  { %1838 = vmatmul.mubr.msk.bf16.gmra.mrb[28].mxu0 %vm138_vm0, %v106_v27 }
  0x41   :  { %1870 = vmatmul.mubr.msk.bf16.gmra.mrb[28].mxu1 %vm138_vm0, %v122_v34 }
  0xd9   :  { %v1811_v36 = vpop.f32.mrb[0].mxu0 }
  0xda   :  { %v278_v37 = vadd.f32 %v1811_v36, %v2292_v35  ;;  %v269_v38 = vpop.f32.mrb[1].mxu0 }
  0xdb   :  { %v270_v39 = vadd.f32 %v2292_v35, %v269_v38  ;;  %v1812_v40 = vpop.f32.mrb[2].mxu0 }
  0xdc   :  { %v281_v41 = vadd.f32 %v1812_v40, %v2292_v35  ;;  %v272_v42 = vpop.f32.mrb[3].mxu0  ;;  %v526_v43 = vmax.f32 %v278_v37, 0.0  ;;  %v1843_v57 = vpop.f32.mrb[0].mxu1 }
  0xdd   :  { %v273_v44 = vadd.f32 %v2292_v35, %v272_v42  ;;  %v524_v48 = vmax.f32 %v270_v39, 0.0  ;;  %v406_v60 = vadd.f32 %v1843_v57, %v2292_v35  ;;  %v397_v61 = vpop.f32.mrb[1].mxu1 }
  0xde   :  { %v527_v46 = vmax.f32 %v281_v41, 0.0  ;;  %v398_v63 = vadd.f32 %v2292_v35, %v397_v61  ;;  %v1844_v0 = vpop.f32.mrb[2].mxu1 }
  0xdf   :  { %v525_v49 = vmax.f32 %v273_v44, 0.0  ;;  %v558_v3 = vmax.f32 %v406_v60, 0.0  ;;  %v409_v4 = vadd.f32 %v1844_v0, %v2292_v35  ;;  %v400_v5 = vpop.f32.mrb[3].mxu1 }
  0xe0   :  { %v589_v50 = vpack.c.bf16 %v527_v46, %v526_v43  ;;  %v556_v8 = vmax.f32 %v398_v63, 0.0  ;;  %v401_v9 = vadd.f32 %v2292_v35, %v400_v5 }
  0xe1   :  { %v588_v51 = vpack.c.bf16 %v525_v49, %v524_v48  ;;  %v1815_v52 = vpop.f32.mrb[4].mxu0  ;;  %v559_v11 = vmax.f32 %v409_v4, 0.0 }
  0xe2   :  { %v294_v53 = vadd.f32 %v1815_v52, %v2292_v35  ;;  %v285_v54 = vpop.f32.mrb[5].mxu0  ;;  %v557_v14 = vmax.f32 %v401_v9, 0.0 }
  0xe3   :  { %v286_v55 = vadd.f32 %v2292_v35, %v285_v54  ;;  %v1816_v56 = vpop.f32.mrb[6].mxu0  ;;  %1877 = vmatprep.mubr.msk.bf16.mxu1 %vm643_vm1, %v588_v51  ;;  %v2315_v17 = vpack.c.bf16 %v559_v11, %v558_v3 }
  0xe4   :  { %v297_v58 = vadd.f32 %v1816_v56, %v2292_v35  ;;  %v288_v59 = vpop.f32.mrb[7].mxu0  ;;  %1878 = vmatmul.mubr.msk.bf16.vlgmr.msra.gmra.mrb[32].mxu1 %vm643_vm1, %v589_v50  ;;  %v530_v1 = vmax.f32 %v294_v53, 0.0  ;;  %v2319_v20 = vpack.c.bf16 %v557_v14, %v556_v8  ;;  %v1847_v21 = vpop.f32.mrb[4].mxu1 }
  0xe5   :  { %v289_v62 = vadd.f32 %v2292_v35, %v288_v59  ;;  %v528_v6 = vmax.f32 %v286_v55, 0.0  ;;  %v422_v24 = vadd.f32 %v1847_v21, %v2292_v35  ;;  %v413_v25 = vpop.f32.mrb[5].mxu1 }
  0xe6   :  { %v531_v2 = vmax.f32 %v297_v58, 0.0  ;;  %v414_v27 = vadd.f32 %v2292_v35, %v413_v25  ;;  %v1848_v28 = vpop.f32.mrb[6].mxu1 }
  0xe7   :  { %v529_v7 = vmax.f32 %v289_v62, 0.0  ;;  %v562_v31 = vmax.f32 %v422_v24, 0.0  ;;  %v425_v32 = vadd.f32 %v1848_v28, %v2292_v35  ;;  %v416_v33 = vpop.f32.mrb[7].mxu1 }
  0xe8   :  { %v591_v10 = vpack.c.bf16 %v531_v2, %v530_v1  ;;  %v560_v37 = vmax.f32 %v414_v27, 0.0  ;;  %v417_v38 = vadd.f32 %v2292_v35, %v416_v33 }
  0xe9   :  { %v590_v12 = vpack.c.bf16 %v529_v7, %v528_v6  ;;  %v1819_v13 = vpop.f32.mrb[8].mxu0  ;;  %v563_v40 = vmax.f32 %v425_v32, 0.0 }
  0xea   :  { %v310_v15 = vadd.f32 %v1819_v13, %v2292_v35  ;;  %v301_v16 = vpop.f32.mrb[9].mxu0  ;;  %v561_v43 = vmax.f32 %v417_v38, 0.0 }
  0xeb   :  { %v302_v18 = vadd.f32 %v2292_v35, %v301_v16  ;;  %v1820_v19 = vpop.f32.mrb[10].mxu0  ;;  %1881 = vmatprep.mubr.msk.bf16.mxu1 %vm643_vm1, %v590_v12  ;;  %v2329_v46 = vpack.c.bf16 %v563_v40, %v562_v31 }
  0xec   :  { %v313_v22 = vadd.f32 %v1820_v19, %v2292_v35  ;;  %v304_v23 = vpop.f32.mrb[11].mxu0  ;;  %1882 = vmatmul.mubr.msk.bf16.gmra.mrb[36].mxu1 %vm643_vm1, %v591_v10  ;;  %v534_v29 = vmax.f32 %v310_v15, 0.0  ;;  %v2333_v49 = vpack.c.bf16 %v561_v43, %v560_v37  ;;  %v1851_v50 = vpop.f32.mrb[8].mxu1 }
  0xed   :  { %v305_v26 = vadd.f32 %v2292_v35, %v304_v23  ;;  %v532_v34 = vmax.f32 %v302_v18, 0.0  ;;  %v438_v53 = vadd.f32 %v1851_v50, %v2292_v35  ;;  %v429_v54 = vpop.f32.mrb[9].mxu1 }
  0xee   :  { %v535_v30 = vmax.f32 %v313_v22, 0.0  ;;  %v430_v56 = vadd.f32 %v2292_v35, %v429_v54  ;;  %v1852_v57 = vpop.f32.mrb[10].mxu1 }
  0xef   :  { %v533_v36 = vmax.f32 %v305_v26, 0.0  ;;  %v566_v60 = vmax.f32 %v438_v53, 0.0  ;;  %v441_v61 = vadd.f32 %v1852_v57, %v2292_v35  ;;  %v432_v62 = vpop.f32.mrb[11].mxu1 }
  0xf0   :  { %v593_v39 = vpack.c.bf16 %v535_v30, %v534_v29  ;;  %v564_v1 = vmax.f32 %v430_v56, 0.0  ;;  %v433_v2 = vadd.f32 %v2292_v35, %v432_v62 }
  0xf1   :  { %v592_v41 = vpack.c.bf16 %v533_v36, %v532_v34  ;;  %v1823_v42 = vpop.f32.mrb[12].mxu0  ;;  %v567_v4 = vmax.f32 %v441_v61, 0.0 }
  0xf2   :  { %v326_v44 = vadd.f32 %v1823_v42, %v2292_v35  ;;  %v317_v45 = vpop.f32.mrb[13].mxu0  ;;  %v565_v7 = vmax.f32 %v433_v2, 0.0 }
  0xf3   :  { %v318_v47 = vadd.f32 %v2292_v35, %v317_v45  ;;  %v1824_v48 = vpop.f32.mrb[14].mxu0  ;;  %1885 = vmatprep.mubr.msk.bf16.mxu1 %vm643_vm1, %v592_v41  ;;  %v2343_v10 = vpack.c.bf16 %v567_v4, %v566_v60 }
  0xf4   :  { %v329_v51 = vadd.f32 %v1824_v48, %v2292_v35  ;;  %v320_v52 = vpop.f32.mrb[15].mxu0  ;;  %1886 = vmatmul.mubr.msk.bf16.gmra.mrb[40].mxu1 %vm643_vm1, %v593_v39  ;;  %v538_v58 = vmax.f32 %v326_v44, 0.0  ;;  %v2347_v13 = vpack.c.bf16 %v565_v7, %v564_v1  ;;  %v1855_v14 = vpop.f32.mrb[12].mxu1 }
  0xf5   :  { %v321_v55 = vadd.f32 %v2292_v35, %v320_v52  ;;  %v536_v63 = vmax.f32 %v318_v47, 0.0  ;;  %v454_v18 = vadd.f32 %v1855_v14, %v2292_v35  ;;  %v445_v19 = vpop.f32.mrb[13].mxu1 }
  0xf6   :  { %v539_v59 = vmax.f32 %v329_v51, 0.0  ;;  %v446_v22 = vadd.f32 %v2292_v35, %v445_v19  ;;  %v1856_v23 = vpop.f32.mrb[14].mxu1 }
  0xf7   :  { %v537_v0 = vmax.f32 %v321_v55, 0.0  ;;  %v570_v26 = vmax.f32 %v454_v18, 0.0  ;;  %v457_v27 = vadd.f32 %v1856_v23, %v2292_v35  ;;  %v448_v28 = vpop.f32.mrb[15].mxu1 }
  0xf8   :  { %v595_v3 = vpack.c.bf16 %v539_v59, %v538_v58  ;;  %v568_v31 = vmax.f32 %v446_v22, 0.0  ;;  %v449_v32 = vadd.f32 %v2292_v35, %v448_v28 }
  0xf9   :  { %v594_v5 = vpack.c.bf16 %v537_v0, %v536_v63  ;;  %v1827_v6 = vpop.f32.mrb[16].mxu0  ;;  %v571_v34 = vmax.f32 %v457_v27, 0.0 }
  0xfa   :  { %v342_v8 = vadd.f32 %v1827_v6, %v2292_v35  ;;  %v333_v9 = vpop.f32.mrb[17].mxu0  ;;  %v569_v38 = vmax.f32 %v449_v32, 0.0 }
  0xfb   :  { %v334_v11 = vadd.f32 %v2292_v35, %v333_v9  ;;  %v1828_v12 = vpop.f32.mrb[18].mxu0  ;;  %1889 = vmatprep.mubr.msk.bf16.mxu1 %vm643_vm1, %v594_v5  ;;  %v2357_v41 = vpack.c.bf16 %v571_v34, %v570_v26 }
  0xfc   :  { %v345_v15 = vadd.f32 %v1828_v12, %v2292_v35  ;;  %v336_v16 = vpop.f32.mrb[19].mxu0  ;;  %1890 = vmatmul.mubr.msk.bf16.gmra.mrb[44].mxu1 %vm643_vm1, %v595_v3  ;;  %v542_v24 = vmax.f32 %v342_v8, 0.0  ;;  %v2361_v44 = vpack.c.bf16 %v569_v38, %v568_v31  ;;  %v1859_v45 = vpop.f32.mrb[16].mxu1 }
  0xfd   :  { %v337_v21 = vadd.f32 %v2292_v35, %v336_v16  ;;  %v540_v29 = vmax.f32 %v334_v11, 0.0  ;;  %v470_v50 = vadd.f32 %v1859_v45, %v2292_v35  ;;  %v461_v51 = vpop.f32.mrb[17].mxu1 }
  0xfe   :  { %v543_v25 = vmax.f32 %v345_v15, 0.0  ;;  %v462_v53 = vadd.f32 %v2292_v35, %v461_v51  ;;  %v1860_v54 = vpop.f32.mrb[18].mxu1 }
  0xff   :  { %v541_v30 = vmax.f32 %v337_v21, 0.0  ;;  %v574_v57 = vmax.f32 %v470_v50, 0.0  ;;  %v473_v58 = vadd.f32 %v1860_v54, %v2292_v35  ;;  %v464_v59 = vpop.f32.mrb[19].mxu1 }
 0x100   :  { %v597_v33 = vpack.c.bf16 %v543_v25, %v542_v24  ;;  %v572_v62 = vmax.f32 %v462_v53, 0.0  ;;  %v465_v63 = vadd.f32 %v2292_v35, %v464_v59 }
 0x101   :  { %v596_v36 = vpack.c.bf16 %v541_v30, %v540_v29  ;;  %v1831_v37 = vpop.f32.mrb[20].mxu0  ;;  %v575_v1 = vmax.f32 %v473_v58, 0.0 }
 0x102   :  { %v358_v39 = vadd.f32 %v1831_v37, %v2292_v35  ;;  %v349_v40 = vpop.f32.mrb[21].mxu0  ;;  %v573_v4 = vmax.f32 %v465_v63, 0.0 }
 0x103   :  { %v350_v42 = vadd.f32 %v2292_v35, %v349_v40  ;;  %v1832_v43 = vpop.f32.mrb[22].mxu0  ;;  %1893 = vmatprep.mubr.msk.bf16.mxu1 %vm643_vm1, %v596_v36  ;;  %v2371_v7 = vpack.c.bf16 %v575_v1, %v574_v57 }
 0x104   :  { %v361_v47 = vadd.f32 %v1832_v43, %v2292_v35  ;;  %v352_v48 = vpop.f32.mrb[23].mxu0  ;;  %1894 = vmatmul.mubr.msk.bf16.gmra.mrb[48].mxu1 %vm643_vm1, %v597_v33  ;;  %v546_v55 = vmax.f32 %v358_v39, 0.0  ;;  %v2375_v11 = vpack.c.bf16 %v573_v4, %v572_v62  ;;  %v1863_v12 = vpop.f32.mrb[20].mxu1 }
 0x105   :  { %v353_v52 = vadd.f32 %v2292_v35, %v352_v48  ;;  %v544_v60 = vmax.f32 %v350_v42, 0.0  ;;  %v486_v16 = vadd.f32 %v1863_v12, %v2292_v35  ;;  %v477_v18 = vpop.f32.mrb[21].mxu1 }
 0x106   :  { %v547_v56 = vmax.f32 %v361_v47, 0.0  ;;  %v478_v21 = vadd.f32 %v2292_v35, %v477_v18  ;;  %v1864_v22 = vpop.f32.mrb[22].mxu1 }
 0x107   :  { %v545_v61 = vmax.f32 %v353_v52, 0.0  ;;  %v578_v25 = vmax.f32 %v486_v16, 0.0  ;;  %v489_v26 = vadd.f32 %v1864_v22, %v2292_v35  ;;  %v480_v27 = vpop.f32.mrb[23].mxu1 }
 0x108   :  { %v599_v0 = vpack.c.bf16 %v547_v56, %v546_v55  ;;  %v576_v30 = vmax.f32 %v478_v21, 0.0  ;;  %v481_v31 = vadd.f32 %v2292_v35, %v480_v27 }
 0x109   :  { %v598_v2 = vpack.c.bf16 %v545_v61, %v544_v60  ;;  %v1835_v3 = vpop.f32.mrb[24].mxu0  ;;  %v579_v33 = vmax.f32 %v489_v26, 0.0 }
 0x10a   :  { %v374_v5 = vadd.f32 %v1835_v3, %v2292_v35  ;;  %v365_v6 = vpop.f32.mrb[25].mxu0  ;;  %v577_v37 = vmax.f32 %v481_v31, 0.0 }
 0x10b   :  { %v366_v8 = vadd.f32 %v2292_v35, %v365_v6  ;;  %v1836_v9 = vpop.f32.mrb[26].mxu0  ;;  %1897 = vmatprep.mubr.msk.bf16.mxu1 %vm643_vm1, %v598_v2  ;;  %v615_v40 = vpack.c.bf16 %v579_v33, %v578_v25 }
 0x10c   :  { %v377_v14 = vadd.f32 %v1836_v9, %v2292_v35  ;;  %v368_v15 = vpop.f32.mrb[27].mxu0  ;;  %1898 = vmatmul.mubr.msk.bf16.gmra.mrb[52].mxu1 %vm643_vm1, %v599_v0  ;;  %v550_v23 = vmax.f32 %v374_v5, 0.0  ;;  %v614_v45 = vpack.c.bf16 %v577_v37, %v576_v30  ;;  %v1867_v47 = vpop.f32.mrb[24].mxu1 }
 0x10d   :  { %v369_v19 = vadd.f32 %v2292_v35, %v368_v15  ;;  %v548_v28 = vmax.f32 %v366_v8, 0.0  ;;  %v502_v51 = vadd.f32 %v1867_v47, %v2292_v35  ;;  %v493_v52 = vpop.f32.mrb[25].mxu1 }
 0x10e   :  { %v551_v24 = vmax.f32 %v377_v14, 0.0  ;;  %v494_v54 = vadd.f32 %v2292_v35, %v493_v52  ;;  %v1868_v55 = vpop.f32.mrb[26].mxu1 }
 0x10f   :  { %v549_v29 = vmax.f32 %v369_v19, 0.0  ;;  %v582_v58 = vmax.f32 %v502_v51, 0.0  ;;  %v505_v59 = vadd.f32 %v1868_v55, %v2292_v35  ;;  %v496_v60 = vpop.f32.mrb[27].mxu1 }
 0x110   :  { %v601_v32 = vpack.c.bf16 %v551_v24, %v550_v23  ;;  %v580_v63 = vmax.f32 %v494_v54, 0.0  ;;  %v497_v0 = vadd.f32 %v2292_v35, %v496_v60 }
 0x111   :  { %v600_v34 = vpack.c.bf16 %v549_v29, %v548_v28  ;;  %v1839_v36 = vpop.f32.mrb[28].mxu0  ;;  %v583_v2 = vmax.f32 %v505_v59, 0.0 }
 0x112   :  { %v390_v38 = vadd.f32 %v1839_v36, %v2292_v35  ;;  %v381_v39 = vpop.f32.mrb[29].mxu0  ;;  %v581_v4 = vmax.f32 %v497_v0, 0.0 }
 0x113   :  { %v382_v42 = vadd.f32 %v2292_v35, %v381_v39  ;;  %v1840_v43 = vpop.f32.mrb[30].mxu0  ;;  %1901 = vmatprep.mubr.msk.bf16.mxu1 %vm643_vm1, %v600_v34  ;;  %v617_v5 = vpack.c.bf16 %v583_v2, %v582_v58 }
 0x114   :  { %v393_v48 = vadd.f32 %v1840_v43, %v2292_v35  ;;  %v384_v50 = vpop.f32.mrb[31].mxu0  ;;  %1902 = vmatmul.mubr.msk.bf16.gmra.mrb[56].mxu1 %vm643_vm1, %v601_v32  ;;  %v554_v56 = vmax.f32 %v390_v38, 0.0  ;;  %v616_v6 = vpack.c.bf16 %v581_v4, %v580_v63  ;;  %v1871_v8 = vpop.f32.mrb[28].mxu1 }
 0x115   :  { %v385_v53 = vadd.f32 %v2292_v35, %v384_v50  ;;  %v552_v61 = vmax.f32 %v382_v42, 0.0  ;;  %v518_v9 = vadd.f32 %v1871_v8, %v2292_v35  ;;  %v509_v12 = vpop.f32.mrb[29].mxu1 }
 0x116   :  { %v555_v57 = vmax.f32 %v393_v48, 0.0  ;;  %v510_v14 = vadd.f32 %v2292_v35, %v509_v12  ;;  %v1872_v15 = vpop.f32.mrb[30].mxu1 }
 0x117   :  { %v553_v62 = vmax.f32 %v385_v53, 0.0  ;;  %v586_v16 = vmax.f32 %v518_v9, 0.0  ;;  %v521_v18 = vadd.f32 %v1872_v15, %v2292_v35  ;;  %v512_v19 = vpop.f32.mrb[31].mxu1 }
 0x118   :  { %v603_v1 = vpack.c.bf16 %v555_v57, %v554_v56  ;;  %v584_v21 = vmax.f32 %v510_v14, 0.0  ;;  %v513_v22 = vadd.f32 %v2292_v35, %v512_v19  ;;  %v2429_v35 = vld [vmem:[%s2857_s4] ss:$0 sm:$0xff] }
 0x119   :  { %v602_v3 = vpack.c.bf16 %v553_v62, %v552_v61  ;;  %v587_v23 = vmax.f32 %v521_v18, 0.0 }
 0x11a   :  { %v585_v24 = vmax.f32 %v513_v22, 0.0 }
 0x11b   :  { %1905 = vmatprep.mubr.msk.bf16.mxu1 %vm643_vm1, %v602_v3  ;;  %v619_v25 = vpack.c.bf16 %v587_v23, %v586_v16 }
 0x11c   :  { %1906 = vmatmul.mubr.msk.bf16.gmra.mrb[60].mxu1 %vm643_vm1, %v603_v1  ;;  %v618_v26 = vpack.c.bf16 %v585_v24, %v584_v21 }
 0x11d   :  { %1909 = vmatprep.mubr.msk.bf16.mxu1 %vm643_vm1, %v2319_v20 }
 0x124   :  { %1910 = vmatmul.mubr.msk.bf16.gmra.mrb[64].mxu1 %vm643_vm1, %v2315_v17 }
 0x125   :  { %1913 = vmatprep.mubr.msk.bf16.mxu1 %vm643_vm1, %v2333_v49 }
 0x12c   :  { %1914 = vmatmul.mubr.msk.bf16.gmra.mrb[68].mxu1 %vm643_vm1, %v2329_v46 }
 0x12d   :  { %1917 = vmatprep.mubr.msk.bf16.mxu1 %vm643_vm1, %v2347_v13 }
 0x134   :  { %1918 = vmatmul.mubr.msk.bf16.gmra.mrb[72].mxu1 %vm643_vm1, %v2343_v10 }
 0x135   :  { %1921 = vmatprep.mubr.msk.bf16.mxu1 %vm643_vm1, %v2361_v44 }
 0x13c   :  { %1922 = vmatmul.mubr.msk.bf16.gmra.mrb[76].mxu1 %vm643_vm1, %v2357_v41 }
 0x13d   :  { %1925 = vmatprep.mubr.msk.bf16.mxu1 %vm643_vm1, %v2375_v11 }
 0x144   :  { %1926 = vmatmul.mubr.msk.bf16.gmra.mrb[80].mxu1 %vm643_vm1, %v2371_v7 }
 0x145   :  { %1929 = vmatprep.mubr.msk.bf16.mxu1 %vm643_vm1, %v614_v45 }
 0x14c   :  { %1930 = vmatmul.mubr.msk.bf16.gmra.mrb[84].mxu1 %vm643_vm1, %v615_v40 }
 0x14d   :  { %1933 = vmatprep.mubr.msk.bf16.mxu1 %vm643_vm1, %v616_v6 }
 0x154   :  { %1934 = vmatmul.mubr.msk.bf16.gmra.mrb[88].mxu1 %vm643_vm1, %v617_v5 }
 0x155   :  { %1937 = vmatprep.mubr.msk.bf16.mxu1 %vm643_vm1, %v618_v26 }
 0x15c   :  { %1938 = vmatmul.mubr.msk.bf16.gmra.mrb[92].mxu1 %vm643_vm1, %v619_v25 }
 0x1b7   :  { %v1879_v17 = vpop.f32.mrb[32].mxu1 }
 0x1b8   :  { %v783_v20 = vadd.f32 %v1879_v17, %v2429_v35  ;;  %v774_v46 = vpop.f32.mrb[33].mxu1 }
 0x1b9   :  { %v775_v49 = vadd.f32 %v2429_v35, %v774_v46  ;;  %v1880_v10 = vpop.f32.mrb[34].mxu1 }
 0x1ba   :  { %v786_v13 = vadd.f32 %v1880_v10, %v2429_v35  ;;  %v777_v41 = vpop.f32.mrb[35].mxu1  ;;  %v1031_v7 = vmax.f32 %v783_v20, 0.0 }
 0x1bb   :  { %v778_v44 = vadd.f32 %v2429_v35, %v777_v41  ;;  %v1029_v27 = vmax.f32 %v775_v49, 0.0 }
 0x1bc   :  { %v1032_v11 = vmax.f32 %v786_v13, 0.0 }
 0x1bd   :  { %v1030_v28 = vmax.f32 %v778_v44, 0.0 }
 0x1be   :  { %v1094_v29 = vpack.c.bf16 %v1032_v11, %v1031_v7 }
 0x1bf   :  { %v1093_v30 = vpack.c.bf16 %v1030_v28, %v1029_v27  ;;  %v1883_v31 = vpop.f32.mrb[36].mxu1 }
 0x1c0   :  { %v799_v32 = vadd.f32 %v1883_v31, %v2429_v35  ;;  %v790_v33 = vpop.f32.mrb[37].mxu1 }
 0x1c1   :  { %v791_v34 = vadd.f32 %v2429_v35, %v790_v33  ;;  %v1884_v36 = vpop.f32.mrb[38].mxu1  ;;  %1945 = vmatprep.mubr.msk.bf16.mxu0 %vm643_vm1, %v1093_v30 }
 0x1c2   :  { %v802_v37 = vadd.f32 %v1884_v36, %v2429_v35  ;;  %v793_v38 = vpop.f32.mrb[39].mxu1  ;;  %1946 = vmatmul.mubr.msk.bf16.vlgmr.msra.gmra.mrb[32].mxu0 %vm643_vm1, %v1094_v29  ;;  %v1035_v40 = vmax.f32 %v799_v32, 0.0 }
 0x1c3   :  { %v794_v39 = vadd.f32 %v2429_v35, %v793_v38  ;;  %v1033_v43 = vmax.f32 %v791_v34, 0.0 }
 0x1c4   :  { %v1036_v42 = vmax.f32 %v802_v37, 0.0 }
 0x1c5   :  { %v1034_v45 = vmax.f32 %v794_v39, 0.0 }
 0x1c6   :  { %v1096_v47 = vpack.c.bf16 %v1036_v42, %v1035_v40 }
 0x1c7   :  { %v1095_v48 = vpack.c.bf16 %v1034_v45, %v1033_v43  ;;  %v1887_v50 = vpop.f32.mrb[40].mxu1 }
 0x1c8   :  { %v815_v51 = vadd.f32 %v1887_v50, %v2429_v35  ;;  %v806_v52 = vpop.f32.mrb[41].mxu1 }
 0x1c9   :  { %v807_v53 = vadd.f32 %v2429_v35, %v806_v52  ;;  %v1888_v54 = vpop.f32.mrb[42].mxu1  ;;  %1949 = vmatprep.mubr.msk.bf16.mxu0 %vm643_vm1, %v1095_v48 }
 0x1ca   :  { %v818_v55 = vadd.f32 %v1888_v54, %v2429_v35  ;;  %v809_v56 = vpop.f32.mrb[43].mxu1  ;;  %1950 = vmatmul.mubr.msk.bf16.gmra.mrb[36].mxu0 %vm643_vm1, %v1096_v47  ;;  %v1039_v58 = vmax.f32 %v815_v51, 0.0 }
 0x1cb   :  { %v810_v57 = vadd.f32 %v2429_v35, %v809_v56  ;;  %v1037_v60 = vmax.f32 %v807_v53, 0.0 }
 0x1cc   :  { %v1040_v59 = vmax.f32 %v818_v55, 0.0 }
 0x1cd   :  { %v1038_v61 = vmax.f32 %v810_v57, 0.0 }
 0x1ce   :  { %v1098_v62 = vpack.c.bf16 %v1040_v59, %v1039_v58 }
 0x1cf   :  { %v1097_v63 = vpack.c.bf16 %v1038_v61, %v1037_v60  ;;  %v1891_v0 = vpop.f32.mrb[44].mxu1 }
 0x1d0   :  { %v831_v1 = vadd.f32 %v1891_v0, %v2429_v35  ;;  %v822_v2 = vpop.f32.mrb[45].mxu1 }
 0x1d1   :  { %v823_v3 = vadd.f32 %v2429_v35, %v822_v2  ;;  %v1892_v4 = vpop.f32.mrb[46].mxu1  ;;  %1953 = vmatprep.mubr.msk.bf16.mxu0 %vm643_vm1, %v1097_v63 }
 0x1d2   :  { %v834_v5 = vadd.f32 %v1892_v4, %v2429_v35  ;;  %v825_v6 = vpop.f32.mrb[47].mxu1  ;;  %1954 = vmatmul.mubr.msk.bf16.gmra.mrb[40].mxu0 %vm643_vm1, %v1098_v62  ;;  %v1043_v9 = vmax.f32 %v831_v1, 0.0 }
 0x1d3   :  { %v826_v8 = vadd.f32 %v2429_v35, %v825_v6  ;;  %v1041_v14 = vmax.f32 %v823_v3, 0.0 }
 0x1d4   :  { %v1044_v12 = vmax.f32 %v834_v5, 0.0 }
 0x1d5   :  { %v1042_v15 = vmax.f32 %v826_v8, 0.0 }
 0x1d6   :  { %v1100_v16 = vpack.c.bf16 %v1044_v12, %v1043_v9 }
 0x1d7   :  { %v1099_v18 = vpack.c.bf16 %v1042_v15, %v1041_v14  ;;  %v1895_v19 = vpop.f32.mrb[48].mxu1 }
 0x1d8   :  { %v847_v21 = vadd.f32 %v1895_v19, %v2429_v35  ;;  %v838_v22 = vpop.f32.mrb[49].mxu1 }
 0x1d9   :  { %v839_v23 = vadd.f32 %v2429_v35, %v838_v22  ;;  %v1896_v24 = vpop.f32.mrb[50].mxu1  ;;  %1957 = vmatprep.mubr.msk.bf16.mxu0 %vm643_vm1, %v1099_v18 }
 0x1da   :  { %v850_v25 = vadd.f32 %v1896_v24, %v2429_v35  ;;  %v841_v26 = vpop.f32.mrb[51].mxu1  ;;  %1958 = vmatmul.mubr.msk.bf16.gmra.mrb[44].mxu0 %vm643_vm1, %v1100_v16  ;;  %v1047_v20 = vmax.f32 %v847_v21, 0.0 }
 0x1db   :  { %v842_v17 = vadd.f32 %v2429_v35, %v841_v26  ;;  %v1045_v49 = vmax.f32 %v839_v23, 0.0 }
 0x1dc   :  { %v1048_v46 = vmax.f32 %v850_v25, 0.0 }
 0x1dd   :  { %v1046_v10 = vmax.f32 %v842_v17, 0.0 }
 0x1de   :  { %v1102_v13 = vpack.c.bf16 %v1048_v46, %v1047_v20 }
 0x1df   :  { %v1101_v41 = vpack.c.bf16 %v1046_v10, %v1045_v49  ;;  %v1899_v44 = vpop.f32.mrb[52].mxu1 }
 0x1e0   :  { %v863_v7 = vadd.f32 %v1899_v44, %v2429_v35  ;;  %v854_v11 = vpop.f32.mrb[53].mxu1 }
 0x1e1   :  { %v855_v27 = vadd.f32 %v2429_v35, %v854_v11  ;;  %v1900_v28 = vpop.f32.mrb[54].mxu1  ;;  %1961 = vmatprep.mubr.msk.bf16.mxu0 %vm643_vm1, %v1101_v41 }
 0x1e2   :  { %v866_v29 = vadd.f32 %v1900_v28, %v2429_v35  ;;  %v857_v30 = vpop.f32.mrb[55].mxu1  ;;  %1962 = vmatmul.mubr.msk.bf16.gmra.mrb[48].mxu0 %vm643_vm1, %v1102_v13  ;;  %v1051_v32 = vmax.f32 %v863_v7, 0.0 }
 0x1e3   :  { %v858_v31 = vadd.f32 %v2429_v35, %v857_v30  ;;  %v1049_v34 = vmax.f32 %v855_v27, 0.0 }
 0x1e4   :  { %v1052_v33 = vmax.f32 %v866_v29, 0.0 }
 0x1e5   :  { %v1050_v36 = vmax.f32 %v858_v31, 0.0 }
 0x1e6   :  { %v1104_v37 = vpack.c.bf16 %v1052_v33, %v1051_v32 }
 0x1e7   :  { %v1103_v38 = vpack.c.bf16 %v1050_v36, %v1049_v34  ;;  %v1903_v39 = vpop.f32.mrb[56].mxu1 }
 0x1e8   :  { %v879_v40 = vadd.f32 %v1903_v39, %v2429_v35  ;;  %v870_v42 = vpop.f32.mrb[57].mxu1 }
 0x1e9   :  { %v871_v43 = vadd.f32 %v2429_v35, %v870_v42  ;;  %v1904_v45 = vpop.f32.mrb[58].mxu1  ;;  %1965 = vmatprep.mubr.msk.bf16.mxu0 %vm643_vm1, %v1103_v38 }
 0x1ea   :  { %v882_v47 = vadd.f32 %v1904_v45, %v2429_v35  ;;  %v873_v48 = vpop.f32.mrb[59].mxu1  ;;  %1966 = vmatmul.mubr.msk.bf16.gmra.mrb[52].mxu0 %vm643_vm1, %v1104_v37  ;;  %v1055_v51 = vmax.f32 %v879_v40, 0.0 }
 0x1eb   :  { %v874_v50 = vadd.f32 %v2429_v35, %v873_v48  ;;  %v1053_v53 = vmax.f32 %v871_v43, 0.0 }
 0x1ec   :  { %v1056_v52 = vmax.f32 %v882_v47, 0.0 }
 0x1ed   :  { %v1054_v54 = vmax.f32 %v874_v50, 0.0 }
 0x1ee   :  { %v1106_v55 = vpack.c.bf16 %v1056_v52, %v1055_v51 }
 0x1ef   :  { %v1105_v56 = vpack.c.bf16 %v1054_v54, %v1053_v53  ;;  %v1907_v57 = vpop.f32.mrb[60].mxu1 }
 0x1f0   :  { %v895_v58 = vadd.f32 %v1907_v57, %v2429_v35  ;;  %v886_v59 = vpop.f32.mrb[61].mxu1 }
 0x1f1   :  { %v887_v60 = vadd.f32 %v2429_v35, %v886_v59  ;;  %v1908_v61 = vpop.f32.mrb[62].mxu1  ;;  %1969 = vmatprep.mubr.msk.bf16.mxu0 %vm643_vm1, %v1105_v56 }
 0x1f2   :  { %v898_v62 = vadd.f32 %v1908_v61, %v2429_v35  ;;  %v889_v63 = vpop.f32.mrb[63].mxu1  ;;  %1970 = vmatmul.mubr.msk.bf16.gmra.mrb[56].mxu0 %vm643_vm1, %v1106_v55  ;;  %v1059_v1 = vmax.f32 %v895_v58, 0.0 }
 0x1f3   :  { %v890_v0 = vadd.f32 %v2429_v35, %v889_v63  ;;  %v1057_v3 = vmax.f32 %v887_v60, 0.0 }
 0x1f4   :  { %v1060_v2 = vmax.f32 %v898_v62, 0.0 }
 0x1f5   :  { %v1058_v4 = vmax.f32 %v890_v0, 0.0 }
 0x1f6   :  { %v1108_v5 = vpack.c.bf16 %v1060_v2, %v1059_v1 }
 0x1f7   :  { %v1107_v6 = vpack.c.bf16 %v1058_v4, %v1057_v3  ;;  %v1911_v8 = vpop.f32.mrb[64].mxu1 }
 0x1f8   :  { %v911_v9 = vadd.f32 %v1911_v8, %v2429_v35  ;;  %v902_v12 = vpop.f32.mrb[65].mxu1 }
 0x1f9   :  { %v903_v14 = vadd.f32 %v2429_v35, %v902_v12  ;;  %v1912_v15 = vpop.f32.mrb[66].mxu1  ;;  %1973 = vmatprep.mubr.msk.bf16.mxu0 %vm643_vm1, %v1107_v6 }
 0x1fa   :  { %v914_v16 = vadd.f32 %v1912_v15, %v2429_v35  ;;  %v905_v18 = vpop.f32.mrb[67].mxu1  ;;  %1974 = vmatmul.mubr.msk.bf16.gmra.mrb[60].mxu0 %vm643_vm1, %v1108_v5  ;;  %v1063_v21 = vmax.f32 %v911_v9, 0.0 }
 0x1fb   :  { %v906_v19 = vadd.f32 %v2429_v35, %v905_v18  ;;  %v1061_v23 = vmax.f32 %v903_v14, 0.0 }
 0x1fc   :  { %v1064_v22 = vmax.f32 %v914_v16, 0.0 }
 0x1fd   :  { %v1062_v24 = vmax.f32 %v906_v19, 0.0 }
 0x1fe   :  { %v1110_v25 = vpack.c.bf16 %v1064_v22, %v1063_v21 }
 0x1ff   :  { %v1109_v26 = vpack.c.bf16 %v1062_v24, %v1061_v23  ;;  %v1915_v17 = vpop.f32.mrb[68].mxu1 }
 0x200   :  { %v927_v20 = vadd.f32 %v1915_v17, %v2429_v35  ;;  %v918_v46 = vpop.f32.mrb[69].mxu1 }
 0x201   :  { %v919_v49 = vadd.f32 %v2429_v35, %v918_v46  ;;  %v1916_v10 = vpop.f32.mrb[70].mxu1  ;;  %1977 = vmatprep.mubr.msk.bf16.mxu0 %vm643_vm1, %v1109_v26 }
 0x202   :  { %v930_v13 = vadd.f32 %v1916_v10, %v2429_v35  ;;  %v921_v41 = vpop.f32.mrb[71].mxu1  ;;  %1978 = vmatmul.mubr.msk.bf16.gmra.mrb[64].mxu0 %vm643_vm1, %v1110_v25  ;;  %v1067_v7 = vmax.f32 %v927_v20, 0.0 }
 0x203   :  { %v922_v44 = vadd.f32 %v2429_v35, %v921_v41  ;;  %v1065_v27 = vmax.f32 %v919_v49, 0.0 }
 0x204   :  { %v1068_v11 = vmax.f32 %v930_v13, 0.0 }
 0x205   :  { %v1066_v28 = vmax.f32 %v922_v44, 0.0 }
 0x206   :  { %v1112_v29 = vpack.c.bf16 %v1068_v11, %v1067_v7 }
 0x207   :  { %v1111_v30 = vpack.c.bf16 %v1066_v28, %v1065_v27  ;;  %v1919_v31 = vpop.f32.mrb[72].mxu1 }
 0x208   :  { %v943_v32 = vadd.f32 %v1919_v31, %v2429_v35  ;;  %v934_v33 = vpop.f32.mrb[73].mxu1 }
 0x209   :  { %v935_v34 = vadd.f32 %v2429_v35, %v934_v33  ;;  %v1920_v36 = vpop.f32.mrb[74].mxu1  ;;  %1981 = vmatprep.mubr.msk.bf16.mxu0 %vm643_vm1, %v1111_v30 }
 0x20a   :  { %v946_v37 = vadd.f32 %v1920_v36, %v2429_v35  ;;  %v937_v38 = vpop.f32.mrb[75].mxu1  ;;  %1982 = vmatmul.mubr.msk.bf16.gmra.mrb[68].mxu0 %vm643_vm1, %v1112_v29  ;;  %v1071_v40 = vmax.f32 %v943_v32, 0.0 }
 0x20b   :  { %v938_v39 = vadd.f32 %v2429_v35, %v937_v38  ;;  %v1069_v43 = vmax.f32 %v935_v34, 0.0 }
 0x20c   :  { %v1072_v42 = vmax.f32 %v946_v37, 0.0 }
 0x20d   :  { %v1070_v45 = vmax.f32 %v938_v39, 0.0 }
 0x20e   :  { %v1114_v47 = vpack.c.bf16 %v1072_v42, %v1071_v40 }
 0x20f   :  { %v1113_v48 = vpack.c.bf16 %v1070_v45, %v1069_v43  ;;  %v1923_v50 = vpop.f32.mrb[76].mxu1 }
 0x210   :  { %v959_v51 = vadd.f32 %v1923_v50, %v2429_v35  ;;  %v950_v52 = vpop.f32.mrb[77].mxu1 }
 0x211   :  { %v951_v53 = vadd.f32 %v2429_v35, %v950_v52  ;;  %v1924_v54 = vpop.f32.mrb[78].mxu1  ;;  %1985 = vmatprep.mubr.msk.bf16.mxu0 %vm643_vm1, %v1113_v48 }
 0x212   :  { %v962_v55 = vadd.f32 %v1924_v54, %v2429_v35  ;;  %v953_v56 = vpop.f32.mrb[79].mxu1  ;;  %1986 = vmatmul.mubr.msk.bf16.gmra.mrb[72].mxu0 %vm643_vm1, %v1114_v47  ;;  %v1075_v58 = vmax.f32 %v959_v51, 0.0 }
 0x213   :  { %v954_v57 = vadd.f32 %v2429_v35, %v953_v56  ;;  %v1073_v60 = vmax.f32 %v951_v53, 0.0 }
 0x214   :  { %v1076_v59 = vmax.f32 %v962_v55, 0.0 }
 0x215   :  { %v1074_v61 = vmax.f32 %v954_v57, 0.0  ;;  %v2530_v57 = vld [vmem:[%s2858_s6] ss:$0 sm:$0xff] }
 0x216   :  { %v1116_v62 = vpack.c.bf16 %v1076_v59, %v1075_v58 }
 0x217   :  { %v1115_v63 = vpack.c.bf16 %v1074_v61, %v1073_v60  ;;  %v1927_v0 = vpop.f32.mrb[80].mxu1 }
 0x218   :  { %v975_v1 = vadd.f32 %v1927_v0, %v2429_v35  ;;  %v966_v2 = vpop.f32.mrb[81].mxu1 }
 0x219   :  { %v967_v3 = vadd.f32 %v2429_v35, %v966_v2  ;;  %v1928_v4 = vpop.f32.mrb[82].mxu1  ;;  %1989 = vmatprep.mubr.msk.bf16.mxu0 %vm643_vm1, %v1115_v63 }
 0x21a   :  { %v978_v5 = vadd.f32 %v1928_v4, %v2429_v35  ;;  %v969_v6 = vpop.f32.mrb[83].mxu1  ;;  %1990 = vmatmul.mubr.msk.bf16.gmra.mrb[76].mxu0 %vm643_vm1, %v1116_v62  ;;  %v1079_v9 = vmax.f32 %v975_v1, 0.0 }
 0x21b   :  { %v970_v8 = vadd.f32 %v2429_v35, %v969_v6  ;;  %v1077_v14 = vmax.f32 %v967_v3, 0.0 }
 0x21c   :  { %v1080_v12 = vmax.f32 %v978_v5, 0.0 }
 0x21d   :  { %v1078_v15 = vmax.f32 %v970_v8, 0.0 }
 0x21e   :  { %v1118_v16 = vpack.c.bf16 %v1080_v12, %v1079_v9 }
 0x21f   :  { %v1117_v18 = vpack.c.bf16 %v1078_v15, %v1077_v14  ;;  %v1931_v19 = vpop.f32.mrb[84].mxu1 }
 0x220   :  { %v991_v21 = vadd.f32 %v1931_v19, %v2429_v35  ;;  %v982_v22 = vpop.f32.mrb[85].mxu1 }
 0x221   :  { %v983_v23 = vadd.f32 %v2429_v35, %v982_v22  ;;  %v1932_v24 = vpop.f32.mrb[86].mxu1  ;;  %1993 = vmatprep.mubr.msk.bf16.mxu0 %vm643_vm1, %v1117_v18 }
 0x222   :  { %v994_v25 = vadd.f32 %v1932_v24, %v2429_v35  ;;  %v985_v26 = vpop.f32.mrb[87].mxu1  ;;  %1994 = vmatmul.mubr.msk.bf16.gmra.mrb[80].mxu0 %vm643_vm1, %v1118_v16  ;;  %v1083_v20 = vmax.f32 %v991_v21, 0.0 }
 0x223   :  { %v986_v17 = vadd.f32 %v2429_v35, %v985_v26  ;;  %v1081_v49 = vmax.f32 %v983_v23, 0.0 }
 0x224   :  { %v1084_v46 = vmax.f32 %v994_v25, 0.0 }
 0x225   :  { %v1082_v10 = vmax.f32 %v986_v17, 0.0 }
 0x226   :  { %v1120_v13 = vpack.c.bf16 %v1084_v46, %v1083_v20 }
 0x227   :  { %v1119_v41 = vpack.c.bf16 %v1082_v10, %v1081_v49  ;;  %v1935_v44 = vpop.f32.mrb[88].mxu1 }
 0x228   :  { %v1007_v7 = vadd.f32 %v1935_v44, %v2429_v35  ;;  %v998_v11 = vpop.f32.mrb[89].mxu1 }
 0x229   :  { %v999_v27 = vadd.f32 %v2429_v35, %v998_v11  ;;  %v1936_v28 = vpop.f32.mrb[90].mxu1  ;;  %1997 = vmatprep.mubr.msk.bf16.mxu0 %vm643_vm1, %v1119_v41 }
 0x22a   :  { %v1010_v29 = vadd.f32 %v1936_v28, %v2429_v35  ;;  %v1001_v30 = vpop.f32.mrb[91].mxu1  ;;  %1998 = vmatmul.mubr.msk.bf16.gmra.mrb[84].mxu0 %vm643_vm1, %v1120_v13  ;;  %v1087_v32 = vmax.f32 %v1007_v7, 0.0 }
 0x22b   :  { %v1002_v31 = vadd.f32 %v2429_v35, %v1001_v30  ;;  %v1085_v34 = vmax.f32 %v999_v27, 0.0 }
 0x22c   :  { %v1088_v33 = vmax.f32 %v1010_v29, 0.0 }
 0x22d   :  { %v1086_v36 = vmax.f32 %v1002_v31, 0.0 }
 0x22e   :  { %v1122_v37 = vpack.c.bf16 %v1088_v33, %v1087_v32 }
 0x22f   :  { %v1121_v38 = vpack.c.bf16 %v1086_v36, %v1085_v34  ;;  %v1939_v39 = vpop.f32.mrb[92].mxu1 }
 0x230   :  { %v1023_v40 = vadd.f32 %v1939_v39, %v2429_v35  ;;  %v1014_v42 = vpop.f32.mrb[93].mxu1 }
 0x231   :  { %v1015_v43 = vadd.f32 %v2429_v35, %v1014_v42  ;;  %v1940_v45 = vpop.f32.mrb[94].mxu1  ;;  %2001 = vmatprep.mubr.msk.bf16.mxu0 %vm643_vm1, %v1121_v38 }
 0x232   :  { %v1026_v47 = vadd.f32 %v1940_v45, %v2429_v35  ;;  %v1017_v48 = vpop.f32.mrb[95].mxu1  ;;  %2002 = vmatmul.mubr.msk.bf16.gmra.mrb[88].mxu0 %vm643_vm1, %v1122_v37  ;;  %v1091_v51 = vmax.f32 %v1023_v40, 0.0 }
 0x233   :  { %v1018_v50 = vadd.f32 %v2429_v35, %v1017_v48  ;;  %v1089_v53 = vmax.f32 %v1015_v43, 0.0 }
 0x234   :  { %v1092_v52 = vmax.f32 %v1026_v47, 0.0 }
 0x235   :  { %v1090_v54 = vmax.f32 %v1018_v50, 0.0 }
 0x236   :  { %v1124_v55 = vpack.c.bf16 %v1092_v52, %v1091_v51 }
 0x237   :  { %v1123_v56 = vpack.c.bf16 %v1090_v54, %v1089_v53 }
 0x239   :  { %2005 = vmatprep.mubr.msk.bf16.mxu0 %vm643_vm1, %v1123_v56 }
 0x23a   :  { %2006 = vmatmul.mubr.msk.bf16.gmra.mrb[92].mxu0 %vm643_vm1, %v1124_v55 }
 0x295   :  { %v1947_v58 = vpop.f32.mrb[32].mxu0 }
 0x296   :  { %v1287_v59 = vadd.f32 %v1947_v58, %v2530_v57  ;;  %v1278_v35 = vpop.f32.mrb[33].mxu0 }
 0x297   :  { %v1279_v60 = vadd.f32 %v2530_v57, %v1278_v35  ;;  %v1948_v61 = vpop.f32.mrb[34].mxu0 }
 0x298   :  { %1536 = vst.msk [vmem:[%s2859_s7 + $0x10] sm:$0xff] %vm1533_vm2, %v1287_v59  ;;  %v1290_v62 = vadd.f32 %v1948_v61, %v2530_v57  ;;  %v1281_v63 = vpop.f32.mrb[35].mxu0 }
 0x299   :  { %1534 = vst.msk [vmem:[%s2859_s7] sm:$0xff] %vm1533_vm2, %v1279_v60  ;;  %v1282_v0 = vadd.f32 %v2530_v57, %v1281_v63 }
 0x29a   :  { %1537 = vst.msk [vmem:[%s2859_s7 + $0x18] sm:$0xff] %vm1533_vm2, %v1290_v62 }
 0x29b   :  { %1535 = vst.msk [vmem:[%s2859_s7 + $0x8] sm:$0xff] %vm1533_vm2, %v1282_v0 }
 0x29d   :  { %v1951_v1 = vpop.f32.mrb[36].mxu0 }
 0x29e   :  { %v1303_v2 = vadd.f32 %v1951_v1, %v2530_v57  ;;  %v1294_v3 = vpop.f32.mrb[37].mxu0 }
 0x29f   :  { %v1295_v4 = vadd.f32 %v2530_v57, %v1294_v3  ;;  %v1952_v5 = vpop.f32.mrb[38].mxu0 }
 0x2a0   :  { %1540 = vst.msk [vmem:[%s2859_s7 + $0x30] sm:$0xff] %vm1533_vm2, %v1303_v2  ;;  %v1306_v6 = vadd.f32 %v1952_v5, %v2530_v57  ;;  %v1297_v8 = vpop.f32.mrb[39].mxu0 }
 0x2a1   :  { %1538 = vst.msk [vmem:[%s2859_s7 + $0x20] sm:$0xff] %vm1533_vm2, %v1295_v4  ;;  %v1298_v9 = vadd.f32 %v2530_v57, %v1297_v8 }
 0x2a2   :  { %1541 = vst.msk [vmem:[%s2859_s7 + $0x38] sm:$0xff] %vm1533_vm2, %v1306_v6 }
 0x2a3   :  { %1539 = vst.msk [vmem:[%s2859_s7 + $0x28] sm:$0xff] %vm1533_vm2, %v1298_v9 }
 0x2a5   :  { %v1955_v12 = vpop.f32.mrb[40].mxu0 }
 0x2a6   :  { %v1319_v14 = vadd.f32 %v1955_v12, %v2530_v57  ;;  %v1310_v15 = vpop.f32.mrb[41].mxu0 }
 0x2a7   :  { %v1311_v16 = vadd.f32 %v2530_v57, %v1310_v15  ;;  %v1956_v18 = vpop.f32.mrb[42].mxu0 }
 0x2a8   :  { %1544 = vst.msk [vmem:[%s2859_s7 + $0x50] sm:$0xff] %vm1533_vm2, %v1319_v14  ;;  %v1322_v19 = vadd.f32 %v1956_v18, %v2530_v57  ;;  %v1313_v21 = vpop.f32.mrb[43].mxu0 }
 0x2a9   :  { %1542 = vst.msk [vmem:[%s2859_s7 + $0x40] sm:$0xff] %vm1533_vm2, %v1311_v16  ;;  %v1314_v22 = vadd.f32 %v2530_v57, %v1313_v21 }
 0x2aa   :  { %1545 = vst.msk [vmem:[%s2859_s7 + $0x58] sm:$0xff] %vm1533_vm2, %v1322_v19 }
 0x2ab   :  { %1543 = vst.msk [vmem:[%s2859_s7 + $0x48] sm:$0xff] %vm1533_vm2, %v1314_v22 }
 0x2ad   :  { %v1959_v23 = vpop.f32.mrb[44].mxu0 }
 0x2ae   :  { %v1335_v24 = vadd.f32 %v1959_v23, %v2530_v57  ;;  %v1326_v25 = vpop.f32.mrb[45].mxu0 }
 0x2af   :  { %v1327_v26 = vadd.f32 %v2530_v57, %v1326_v25  ;;  %v1960_v17 = vpop.f32.mrb[46].mxu0 }
 0x2b0   :  { %1548 = vst.msk [vmem:[%s2859_s7 + $0x70] sm:$0xff] %vm1533_vm2, %v1335_v24  ;;  %v1338_v20 = vadd.f32 %v1960_v17, %v2530_v57  ;;  %v1329_v46 = vpop.f32.mrb[47].mxu0 }
 0x2b1   :  { %1546 = vst.msk [vmem:[%s2859_s7 + $0x60] sm:$0xff] %vm1533_vm2, %v1327_v26  ;;  %v1330_v49 = vadd.f32 %v2530_v57, %v1329_v46 }
 0x2b2   :  { %1549 = vst.msk [vmem:[%s2859_s7 + $0x78] sm:$0xff] %vm1533_vm2, %v1338_v20 }
 0x2b3   :  { %1547 = vst.msk [vmem:[%s2859_s7 + $0x68] sm:$0xff] %vm1533_vm2, %v1330_v49 }
 0x2b5   :  { %v1963_v10 = vpop.f32.mrb[48].mxu0 }
 0x2b6   :  { %v1351_v13 = vadd.f32 %v1963_v10, %v2530_v57  ;;  %v1342_v41 = vpop.f32.mrb[49].mxu0 }
 0x2b7   :  { %v1343_v44 = vadd.f32 %v2530_v57, %v1342_v41  ;;  %v1964_v7 = vpop.f32.mrb[50].mxu0 }
 0x2b8   :  { %1552 = vst.msk [vmem:[%s2859_s7 + $0x90] sm:$0xff] %vm1533_vm2, %v1351_v13  ;;  %v1354_v11 = vadd.f32 %v1964_v7, %v2530_v57  ;;  %v1345_v27 = vpop.f32.mrb[51].mxu0 }
 0x2b9   :  { %1550 = vst.msk [vmem:[%s2859_s7 + $0x80] sm:$0xff] %vm1533_vm2, %v1343_v44  ;;  %v1346_v28 = vadd.f32 %v2530_v57, %v1345_v27 }
 0x2ba   :  { %1553 = vst.msk [vmem:[%s2859_s7 + $0x98] sm:$0xff] %vm1533_vm2, %v1354_v11 }
 0x2bb   :  { %1551 = vst.msk [vmem:[%s2859_s7 + $0x88] sm:$0xff] %vm1533_vm2, %v1346_v28 }
 0x2bd   :  { %v1967_v29 = vpop.f32.mrb[52].mxu0 }
 0x2be   :  { %v1367_v30 = vadd.f32 %v1967_v29, %v2530_v57  ;;  %v1358_v31 = vpop.f32.mrb[53].mxu0 }
 0x2bf   :  { %v1359_v32 = vadd.f32 %v2530_v57, %v1358_v31  ;;  %v1968_v33 = vpop.f32.mrb[54].mxu0 }
 0x2c0   :  { %1556 = vst.msk [vmem:[%s2859_s7 + $0xb0] sm:$0xff] %vm1533_vm2, %v1367_v30  ;;  %v1370_v34 = vadd.f32 %v1968_v33, %v2530_v57  ;;  %v1361_v36 = vpop.f32.mrb[55].mxu0 }
 0x2c1   :  { %1554 = vst.msk [vmem:[%s2859_s7 + $0xa0] sm:$0xff] %vm1533_vm2, %v1359_v32  ;;  %v1362_v37 = vadd.f32 %v2530_v57, %v1361_v36 }
 0x2c2   :  { %1557 = vst.msk [vmem:[%s2859_s7 + $0xb8] sm:$0xff] %vm1533_vm2, %v1370_v34 }
 0x2c3   :  { %1555 = vst.msk [vmem:[%s2859_s7 + $0xa8] sm:$0xff] %vm1533_vm2, %v1362_v37 }
 0x2c5   :  { %v1971_v38 = vpop.f32.mrb[56].mxu0 }
 0x2c6   :  { %v1383_v39 = vadd.f32 %v1971_v38, %v2530_v57  ;;  %v1374_v40 = vpop.f32.mrb[57].mxu0 }
 0x2c7   :  { %v1375_v42 = vadd.f32 %v2530_v57, %v1374_v40  ;;  %v1972_v43 = vpop.f32.mrb[58].mxu0 }
 0x2c8   :  { %1560 = vst.msk [vmem:[%s2859_s7 + $0xd0] sm:$0xff] %vm1533_vm2, %v1383_v39  ;;  %v1386_v45 = vadd.f32 %v1972_v43, %v2530_v57  ;;  %v1377_v47 = vpop.f32.mrb[59].mxu0 }
 0x2c9   :  { %1558 = vst.msk [vmem:[%s2859_s7 + $0xc0] sm:$0xff] %vm1533_vm2, %v1375_v42  ;;  %v1378_v48 = vadd.f32 %v2530_v57, %v1377_v47 }
 0x2ca   :  { %1561 = vst.msk [vmem:[%s2859_s7 + $0xd8] sm:$0xff] %vm1533_vm2, %v1386_v45 }
 0x2cb   :  { %1559 = vst.msk [vmem:[%s2859_s7 + $0xc8] sm:$0xff] %vm1533_vm2, %v1378_v48 }
 0x2cd   :  { %v1975_v50 = vpop.f32.mrb[60].mxu0 }
 0x2ce   :  { %v1399_v51 = vadd.f32 %v1975_v50, %v2530_v57  ;;  %v1390_v52 = vpop.f32.mrb[61].mxu0 }
 0x2cf   :  { %v1391_v53 = vadd.f32 %v2530_v57, %v1390_v52  ;;  %v1976_v54 = vpop.f32.mrb[62].mxu0 }
 0x2d0   :  { %1564 = vst.msk [vmem:[%s2859_s7 + $0xf0] sm:$0xff] %vm1533_vm2, %v1399_v51  ;;  %v1402_v55 = vadd.f32 %v1976_v54, %v2530_v57  ;;  %v1393_v56 = vpop.f32.mrb[63].mxu0 }
 0x2d1   :  { %1562 = vst.msk [vmem:[%s2859_s7 + $0xe0] sm:$0xff] %vm1533_vm2, %v1391_v53  ;;  %v1394_v58 = vadd.f32 %v2530_v57, %v1393_v56 }
 0x2d2   :  { %1565 = vst.msk [vmem:[%s2859_s7 + $0xf8] sm:$0xff] %vm1533_vm2, %v1402_v55 }
 0x2d3   :  { %1563 = vst.msk [vmem:[%s2859_s7 + $0xe8] sm:$0xff] %vm1533_vm2, %v1394_v58 }
 0x2d5   :  { %v1979_v59 = vpop.f32.mrb[64].mxu0 }
 0x2d6   :  { %v1415_v35 = vadd.f32 %v1979_v59, %v2530_v57  ;;  %v1406_v60 = vpop.f32.mrb[65].mxu0 }
 0x2d7   :  { %v1407_v61 = vadd.f32 %v2530_v57, %v1406_v60  ;;  %v1980_v62 = vpop.f32.mrb[66].mxu0 }
 0x2d8   :  { %1568 = vst.msk [vmem:[%s2859_s7 + $0x110] sm:$0xff] %vm1533_vm2, %v1415_v35  ;;  %v1418_v63 = vadd.f32 %v1980_v62, %v2530_v57  ;;  %v1409_v0 = vpop.f32.mrb[67].mxu0 }
 0x2d9   :  { %1566 = vst.msk [vmem:[%s2859_s7 + $0x100] sm:$0xff] %vm1533_vm2, %v1407_v61  ;;  %v1410_v1 = vadd.f32 %v2530_v57, %v1409_v0 }
 0x2da   :  { %1569 = vst.msk [vmem:[%s2859_s7 + $0x118] sm:$0xff] %vm1533_vm2, %v1418_v63 }
 0x2db   :  { %1567 = vst.msk [vmem:[%s2859_s7 + $0x108] sm:$0xff] %vm1533_vm2, %v1410_v1 }
 0x2dd   :  { %v1983_v2 = vpop.f32.mrb[68].mxu0 }
 0x2de   :  { %v1431_v3 = vadd.f32 %v1983_v2, %v2530_v57  ;;  %v1422_v4 = vpop.f32.mrb[69].mxu0 }
 0x2df   :  { %v1423_v5 = vadd.f32 %v2530_v57, %v1422_v4  ;;  %v1984_v6 = vpop.f32.mrb[70].mxu0 }
 0x2e0   :  { %1572 = vst.msk [vmem:[%s2859_s7 + $0x130] sm:$0xff] %vm1533_vm2, %v1431_v3  ;;  %v1434_v8 = vadd.f32 %v1984_v6, %v2530_v57  ;;  %v1425_v9 = vpop.f32.mrb[71].mxu0 }
 0x2e1   :  { %1570 = vst.msk [vmem:[%s2859_s7 + $0x120] sm:$0xff] %vm1533_vm2, %v1423_v5  ;;  %v1426_v12 = vadd.f32 %v2530_v57, %v1425_v9 }
 0x2e2   :  { %1573 = vst.msk [vmem:[%s2859_s7 + $0x138] sm:$0xff] %vm1533_vm2, %v1434_v8 }
 0x2e3   :  { %1571 = vst.msk [vmem:[%s2859_s7 + $0x128] sm:$0xff] %vm1533_vm2, %v1426_v12 }
 0x2e5   :  { %v1987_v14 = vpop.f32.mrb[72].mxu0 }
 0x2e6   :  { %v1447_v15 = vadd.f32 %v1987_v14, %v2530_v57  ;;  %v1438_v16 = vpop.f32.mrb[73].mxu0 }
 0x2e7   :  { %v1439_v18 = vadd.f32 %v2530_v57, %v1438_v16  ;;  %v1988_v19 = vpop.f32.mrb[74].mxu0 }
 0x2e8   :  { %1576 = vst.msk [vmem:[%s2859_s7 + $0x150] sm:$0xff] %vm1533_vm2, %v1447_v15  ;;  %v1450_v21 = vadd.f32 %v1988_v19, %v2530_v57  ;;  %v1441_v22 = vpop.f32.mrb[75].mxu0 }
 0x2e9   :  { %1574 = vst.msk [vmem:[%s2859_s7 + $0x140] sm:$0xff] %vm1533_vm2, %v1439_v18  ;;  %v1442_v23 = vadd.f32 %v2530_v57, %v1441_v22 }
 0x2ea   :  { %1577 = vst.msk [vmem:[%s2859_s7 + $0x158] sm:$0xff] %vm1533_vm2, %v1450_v21 }
 0x2eb   :  { %1575 = vst.msk [vmem:[%s2859_s7 + $0x148] sm:$0xff] %vm1533_vm2, %v1442_v23 }
 0x2ed   :  { %v1991_v24 = vpop.f32.mrb[76].mxu0 }
 0x2ee   :  { %v1463_v25 = vadd.f32 %v1991_v24, %v2530_v57  ;;  %v1454_v26 = vpop.f32.mrb[77].mxu0 }
 0x2ef   :  { %v1455_v17 = vadd.f32 %v2530_v57, %v1454_v26  ;;  %v1992_v20 = vpop.f32.mrb[78].mxu0 }
 0x2f0   :  { %1580 = vst.msk [vmem:[%s2859_s7 + $0x170] sm:$0xff] %vm1533_vm2, %v1463_v25  ;;  %v1466_v46 = vadd.f32 %v1992_v20, %v2530_v57  ;;  %v1457_v49 = vpop.f32.mrb[79].mxu0 }
 0x2f1   :  { %1578 = vst.msk [vmem:[%s2859_s7 + $0x160] sm:$0xff] %vm1533_vm2, %v1455_v17  ;;  %v1458_v10 = vadd.f32 %v2530_v57, %v1457_v49 }
 0x2f2   :  { %1581 = vst.msk [vmem:[%s2859_s7 + $0x178] sm:$0xff] %vm1533_vm2, %v1466_v46 }
 0x2f3   :  { %1579 = vst.msk [vmem:[%s2859_s7 + $0x168] sm:$0xff] %vm1533_vm2, %v1458_v10 }
 0x2f5   :  { %v1995_v13 = vpop.f32.mrb[80].mxu0 }
 0x2f6   :  { %v1479_v41 = vadd.f32 %v1995_v13, %v2530_v57  ;;  %v1470_v44 = vpop.f32.mrb[81].mxu0 }
 0x2f7   :  { %v1471_v7 = vadd.f32 %v2530_v57, %v1470_v44  ;;  %v1996_v11 = vpop.f32.mrb[82].mxu0 }
 0x2f8   :  { %1584 = vst.msk [vmem:[%s2859_s7 + $0x190] sm:$0xff] %vm1533_vm2, %v1479_v41  ;;  %v1482_v27 = vadd.f32 %v1996_v11, %v2530_v57  ;;  %v1473_v28 = vpop.f32.mrb[83].mxu0 }
 0x2f9   :  { %1582 = vst.msk [vmem:[%s2859_s7 + $0x180] sm:$0xff] %vm1533_vm2, %v1471_v7  ;;  %v1474_v29 = vadd.f32 %v2530_v57, %v1473_v28 }
 0x2fa   :  { %1585 = vst.msk [vmem:[%s2859_s7 + $0x198] sm:$0xff] %vm1533_vm2, %v1482_v27 }
 0x2fb   :  { %1583 = vst.msk [vmem:[%s2859_s7 + $0x188] sm:$0xff] %vm1533_vm2, %v1474_v29 }
 0x2fd   :  { %v1999_v30 = vpop.f32.mrb[84].mxu0 }
 0x2fe   :  { %v1495_v31 = vadd.f32 %v1999_v30, %v2530_v57  ;;  %v1486_v32 = vpop.f32.mrb[85].mxu0 }
 0x2ff   :  { %v1487_v33 = vadd.f32 %v2530_v57, %v1486_v32  ;;  %v2000_v34 = vpop.f32.mrb[86].mxu0 }
 0x300   :  { %1588 = vst.msk [vmem:[%s2859_s7 + $0x1b0] sm:$0xff] %vm1533_vm2, %v1495_v31  ;;  %v1498_v36 = vadd.f32 %v2000_v34, %v2530_v57  ;;  %v1489_v37 = vpop.f32.mrb[87].mxu0 }
 0x301   :  { %1586 = vst.msk [vmem:[%s2859_s7 + $0x1a0] sm:$0xff] %vm1533_vm2, %v1487_v33  ;;  %v1490_v38 = vadd.f32 %v2530_v57, %v1489_v37 }
 0x302   :  { %1589 = vst.msk [vmem:[%s2859_s7 + $0x1b8] sm:$0xff] %vm1533_vm2, %v1498_v36 }
 0x303   :  { %1587 = vst.msk [vmem:[%s2859_s7 + $0x1a8] sm:$0xff] %vm1533_vm2, %v1490_v38 }
 0x305   :  { %v2003_v39 = vpop.f32.mrb[88].mxu0 }
 0x306   :  { %v1511_v40 = vadd.f32 %v2003_v39, %v2530_v57  ;;  %v1502_v42 = vpop.f32.mrb[89].mxu0 }
 0x307   :  { %v1503_v43 = vadd.f32 %v2530_v57, %v1502_v42  ;;  %v2004_v45 = vpop.f32.mrb[90].mxu0 }
 0x308   :  { %1592 = vst.msk [vmem:[%s2859_s7 + $0x1d0] sm:$0xff] %vm1533_vm2, %v1511_v40  ;;  %v1514_v47 = vadd.f32 %v2004_v45, %v2530_v57  ;;  %v1505_v48 = vpop.f32.mrb[91].mxu0 }
 0x309   :  { %1590 = vst.msk [vmem:[%s2859_s7 + $0x1c0] sm:$0xff] %vm1533_vm2, %v1503_v43  ;;  %v1506_v50 = vadd.f32 %v2530_v57, %v1505_v48 }
 0x30a   :  { %1593 = vst.msk [vmem:[%s2859_s7 + $0x1d8] sm:$0xff] %vm1533_vm2, %v1514_v47 }
 0x30b   :  { %1591 = vst.msk [vmem:[%s2859_s7 + $0x1c8] sm:$0xff] %vm1533_vm2, %v1506_v50 }
 0x30d   :  { %v2007_v51 = vpop.f32.mrb[92].mxu0 }
 0x30e   :  { %v1527_v52 = vadd.f32 %v2007_v51, %v2530_v57  ;;  %v1518_v53 = vpop.f32.mrb[93].mxu0 }
 0x30f   :  { %v1519_v54 = vadd.f32 %v2530_v57, %v1518_v53  ;;  %v2008_v55 = vpop.f32.mrb[94].mxu0 }
 0x310   :  { %1596 = vst.msk [vmem:[%s2859_s7 + $0x1f0] sm:$0xff] %vm1533_vm2, %v1527_v52  ;;  %v1530_v56 = vadd.f32 %v2008_v55, %v2530_v57  ;;  %v1521_v58 = vpop.f32.mrb[95].mxu0 }
 0x311   :  { %1594 = vst.msk [vmem:[%s2859_s7 + $0x1e0] sm:$0xff] %vm1533_vm2, %v1519_v54  ;;  %v1522_v59 = vadd.f32 %v2530_v57, %v1521_v58 }
 0x312   :  { %1597 = vst.msk [vmem:[%s2859_s7 + $0x1f8] sm:$0xff] %vm1533_vm2, %v1530_v56 }
 0x313   :  { %1595 = vst.msk [vmem:[%s2859_s7 + $0x1e8] sm:$0xff] %vm1533_vm2, %v1522_v59 }

// kernel: tpu_custom_call.1
= control target key start
LH: loop header
LB: loop body
LE: loop exit
PB: predicated region body
PF: predicated region fallthrough
CT: control target
= control target key end

     0   :  { %vm138_vm0 = vcmask 130048   ;;  %vm643_vm1 = vcmask 261120   ;;  %vm1533_vm2 = vcmask 64512   ;;  %s2852_s1 = inlined_call_operand.vmem [shape: bf16[16,32], index: 1, kind: input, shape index: {}]   ;;  %s2853_s0 = inlined_call_operand.vmem [shape: f32[512,16], index: 0, kind: input, shape index: {}]   ;;  %s2854_s3 = inlined_call_operand.vmem [shape: bf16[32,32], index: 3, kind: input, shape index: {}]   ;;  %s2855_s2 = inlined_call_operand.vmem [shape: f32[1,32], index: 2, kind: input, shape index: {}]   ;;  %s2856_s5 = inlined_call_operand.vmem [shape: bf16[32,8], index: 5, kind: input, shape index: {}]   ;;  %s2857_s4 = inlined_call_operand.vmem [shape: f32[1,32], index: 4, kind: input, shape index: {}]   ;;  %s2858_s6 = inlined_call_operand.vmem [shape: f32[1,8], index: 6, kind: input, shape index: {}]   ;;  %s2859_s7 = inlined_call_operand.vmem [shape: f32[512,8], index: 7, kind: output, shape index: {}]  }
   0x1   :  { %v2011_v0 = vld [vmem:[%s2852_s1] sm:$0xff]   ;;  %v28_v2 = vld [vmem:[%s2853_s0 + $0x8] sm:$0xff]  ;;  %v29_v3 = vld [vmem:[%s2853_s0 + $0x10] sm:$0xff] }
   0x2   :  { %v27_v1 = vld [vmem:[%s2853_s0] sm:$0xff]  ;;  %1807 = vmatprep.subr.bf16.mxu0 %v2011_v0  ;;  %v30_v5 = vld [vmem:[%s2853_s0 + $0x18] sm:$0xff]  ;;  %v32_v7 = vld [vmem:[%s2853_s0 + $0x28] sm:$0xff]  ;;  %2009 = vmatprep.subr.bf16.mxu1 %v2011_v0 }
   0x3   :  { %v91_v4 = vpack.c.bf16 %v28_v2, %v27_v1  ;;  %v31_v6 = vld [vmem:[%s2853_s0 + $0x20] sm:$0xff]  ;;  %1808 = vmatpush3.bf16.msra.mxu0 %v2011_v0  ;;  %v92_v8 = vpack.c.bf16 %v30_v5, %v29_v3  ;;  %2010 = vmatpush3.bf16.msra.mxu1 %v2011_v0  ;;  %v33_v10 = vld [vmem:[%s2853_s0 + $0x30] sm:$0xff]  ;;  %v34_v11 = vld [vmem:[%s2853_s0 + $0x38] sm:$0xff] }
   0x4   :  { %v93_v9 = vpack.c.bf16 %v32_v7, %v31_v6  ;;  %v35_v12 = vld [vmem:[%s2853_s0 + $0x40] sm:$0xff]  ;;  %v36_v13 = vld [vmem:[%s2853_s0 + $0x48] sm:$0xff]  ;;  %v94_v14 = vpack.c.bf16 %v34_v11, %v33_v10  ;;  %v61_v18 = vld [vmem:[%s2853_s0 + $0x110] sm:$0xff] }
   0x5   :  { %1809 = vmatprep.mubr.msk.bf16.mxu0 %vm138_vm0, %v91_v4  ;;  %v95_v15 = vpack.c.bf16 %v36_v13, %v35_v12  ;;  %v59_v16 = vld [vmem:[%s2853_s0 + $0x100] sm:$0xff]  ;;  %v60_v17 = vld [vmem:[%s2853_s0 + $0x108] sm:$0xff]  ;;  %v62_v19 = vld [vmem:[%s2853_s0 + $0x118] sm:$0xff] }
   0x6   :  { %1810 = vmatmul.mubr.msk.bf16.vlgmr.msra.gmra.mrb[0].mxu0 %vm138_vm0, %v92_v8  ;;  %v107_v20 = vpack.c.bf16 %v60_v17, %v59_v16  ;;  %v108_v21 = vpack.c.bf16 %v62_v19, %v61_v18  ;;  %v63_v22 = vld [vmem:[%s2853_s0 + $0x120] sm:$0xff]  ;;  %v64_v23 = vld [vmem:[%s2853_s0 + $0x128] sm:$0xff]  ;;  %v37_v25 = vld [vmem:[%s2853_s0 + $0x50] sm:$0xff] }
   0x7   :  { %1813 = vmatprep.mubr.msk.bf16.mxu0 %vm138_vm0, %v93_v9  ;;  %v109_v24 = vpack.c.bf16 %v64_v23, %v63_v22  ;;  %v38_v26 = vld [vmem:[%s2853_s0 + $0x58] sm:$0xff]  ;;  %v39_v27 = vld [vmem:[%s2853_s0 + $0x60] sm:$0xff]  ;;  %v40_v28 = vld [vmem:[%s2853_s0 + $0x68] sm:$0xff] }
   0x8   :  { %1841 = vmatprep.mubr.msk.bf16.mxu1 %vm138_vm0, %v107_v20  ;;  %v65_v29 = vld [vmem:[%s2853_s0 + $0x130] sm:$0xff]  ;;  %v66_v30 = vld [vmem:[%s2853_s0 + $0x138] sm:$0xff]  ;;  %v96_v31 = vpack.c.bf16 %v38_v26, %v37_v25  ;;  %v67_v32 = vld [vmem:[%s2853_s0 + $0x140] sm:$0xff]  ;;  %v97_v34 = vpack.c.bf16 %v40_v28, %v39_v27 }
   0x9   :  { %1842 = vmatmul.mubr.msk.bf16.vlgmr.msra.gmra.mrb[0].mxu1 %vm138_vm0, %v108_v21  ;;  %v68_v33 = vld [vmem:[%s2853_s0 + $0x148] sm:$0xff]  ;;  %v110_v35 = vpack.c.bf16 %v66_v30, %v65_v29  ;;  %v41_v36 = vld [vmem:[%s2853_s0 + $0x70] sm:$0xff]  ;;  %v42_v38 = vld [vmem:[%s2853_s0 + $0x78] sm:$0xff] }
   0xa   :  { %1845 = vmatprep.mubr.msk.bf16.mxu1 %vm138_vm0, %v109_v24  ;;  %v111_v37 = vpack.c.bf16 %v68_v33, %v67_v32  ;;  %v2012_v39 = vld [vmem:[%s2854_s3] sm:$0xff]   ;;  %v44_v41 = vld [vmem:[%s2853_s0 + $0x88] sm:$0xff]  ;;  %v69_v43 = vld [vmem:[%s2853_s0 + $0x150] sm:$0xff]  ;;  %v98_v45 = vpack.c.bf16 %v42_v38, %v41_v36 }
   0xb   :  { %v43_v40 = vld [vmem:[%s2853_s0 + $0x80] sm:$0xff]  ;;  %v2013_v42 = vld [vmem:[%s2854_s3 + $0x8] sm:$0xff]   ;;  %v70_v44 = vld [vmem:[%s2853_s0 + $0x158] sm:$0xff]  ;;  %1873 = vmatprep.subr.bf16.mxu1 %v2012_v39 }
   0xc   :  { %v71_v46 = vld [vmem:[%s2853_s0 + $0x160] sm:$0xff]  ;;  %v72_v47 = vld [vmem:[%s2853_s0 + $0x168] sm:$0xff]  ;;  %1874 = vmatpush3.bf16.msra.mxu1 %v2012_v39  ;;  %v99_v48 = vpack.c.bf16 %v44_v41, %v43_v40  ;;  %v112_v49 = vpack.c.bf16 %v70_v44, %v69_v43  ;;  %v45_v51 = vld [vmem:[%s2853_s0 + $0x90] sm:$0xff] }
   0xd   :  { %1875 = vmatprep.subr.bf16.mxu1 %v2013_v42  ;;  %v113_v50 = vpack.c.bf16 %v72_v47, %v71_v46  ;;  %v46_v52 = vld [vmem:[%s2853_s0 + $0x98] sm:$0xff]  ;;  %v47_v53 = vld [vmem:[%s2853_s0 + $0xa0] sm:$0xff]  ;;  %v48_v54 = vld [vmem:[%s2853_s0 + $0xa8] sm:$0xff] }
   0xe   :  { %1814 = vmatmul.mubr.msk.bf16.gmra.mrb[4].mxu0 %vm138_vm0, %v94_v14  ;;  %v73_v55 = vld [vmem:[%s2853_s0 + $0x170] sm:$0xff]  ;;  %v74_v56 = vld [vmem:[%s2853_s0 + $0x178] sm:$0xff]  ;;  %v100_v57 = vpack.c.bf16 %v46_v52, %v45_v51  ;;  %v75_v58 = vld [vmem:[%s2853_s0 + $0x180] sm:$0xff]  ;;  %v101_v60 = vpack.c.bf16 %v48_v54, %v47_v53 }
   0xf   :  { %1817 = vmatprep.mubr.msk.bf16.mxu0 %vm138_vm0, %v95_v15  ;;  %v76_v59 = vld [vmem:[%s2853_s0 + $0x188] sm:$0xff]  ;;  %v114_v61 = vpack.c.bf16 %v74_v56, %v73_v55  ;;  %v49_v63 = vld [vmem:[%s2853_s0 + $0xb0] sm:$0xff]  ;;  %v50_v0 = vld [vmem:[%s2853_s0 + $0xb8] sm:$0xff] }
  0x10   :  { %1876 = vmatpush3.bf16.msra.mxu1 %v2013_v42  ;;  %v115_v62 = vpack.c.bf16 %v76_v59, %v75_v58  ;;  %v51_v1 = vld [vmem:[%s2853_s0 + $0xc0] sm:$0xff]  ;;  %v52_v2 = vld [vmem:[%s2853_s0 + $0xc8] sm:$0xff]  ;;  %v77_v3 = vld [vmem:[%s2853_s0 + $0x190] sm:$0xff]  ;;  %v102_v5 = vpack.c.bf16 %v50_v0, %v49_v63 }
  0x11   :  { %1846 = vmatmul.mubr.msk.bf16.gmra.mrb[4].mxu1 %vm138_vm0, %v110_v35  ;;  %v78_v4 = vld [vmem:[%s2853_s0 + $0x198] sm:$0xff]  ;;  %v79_v6 = vld [vmem:[%s2853_s0 + $0x1a0] sm:$0xff]  ;;  %v80_v7 = vld [vmem:[%s2853_s0 + $0x1a8] sm:$0xff]  ;;  %v103_v8 = vpack.c.bf16 %v52_v2, %v51_v1 }
  0x12   :  { %1849 = vmatprep.mubr.msk.bf16.mxu1 %vm138_vm0, %v111_v37  ;;  %v116_v9 = vpack.c.bf16 %v78_v4, %v77_v3  ;;  %v117_v10 = vpack.c.bf16 %v80_v7, %v79_v6  ;;  %v53_v11 = vld [vmem:[%s2853_s0 + $0xd0] sm:$0xff]  ;;  %v54_v12 = vld [vmem:[%s2853_s0 + $0xd8] sm:$0xff]  ;;  %v55_v13 = vld [vmem:[%s2853_s0 + $0xe0] sm:$0xff] }
  0x13   :  { %v56_v14 = vld [vmem:[%s2853_s0 + $0xe8] sm:$0xff]  ;;  %v81_v15 = vld [vmem:[%s2853_s0 + $0x1b0] sm:$0xff]  ;;  %v82_v16 = vld [vmem:[%s2853_s0 + $0x1b8] sm:$0xff]  ;;  %v104_v17 = vpack.c.bf16 %v54_v12, %v53_v11 }
  0x14   :  { %v83_v18 = vld [vmem:[%s2853_s0 + $0x1c0] sm:$0xff]  ;;  %v84_v19 = vld [vmem:[%s2853_s0 + $0x1c8] sm:$0xff]  ;;  %v105_v20 = vpack.c.bf16 %v56_v14, %v55_v13  ;;  %v118_v21 = vpack.c.bf16 %v82_v16, %v81_v15  ;;  %v57_v23 = vld [vmem:[%s2853_s0 + $0xf0] sm:$0xff] }
  0x15   :  { %v119_v22 = vpack.c.bf16 %v84_v19, %v83_v18  ;;  %v58_v24 = vld [vmem:[%s2853_s0 + $0xf8] sm:$0xff]  ;;  %v85_v25 = vld [vmem:[%s2853_s0 + $0x1d0] sm:$0xff]  ;;  %v87_v28 = vld [vmem:[%s2853_s0 + $0x1e0] sm:$0xff] }
  0x16   :  { %1818 = vmatmul.mubr.msk.bf16.gmra.mrb[8].mxu0 %vm138_vm0, %v96_v31  ;;  %v86_v26 = vld [vmem:[%s2853_s0 + $0x1d8] sm:$0xff]  ;;  %v106_v27 = vpack.c.bf16 %v58_v24, %v57_v23  ;;  %v88_v29 = vld [vmem:[%s2853_s0 + $0x1e8] sm:$0xff]  ;;  %v89_v32 = vld [vmem:[%s2853_s0 + $0x1f0] sm:$0xff] }
  0x17   :  { %1821 = vmatprep.mubr.msk.bf16.mxu0 %vm138_vm0, %v97_v34  ;;  %v120_v30 = vpack.c.bf16 %v86_v26, %v85_v25  ;;  %v121_v31 = vpack.c.bf16 %v88_v29, %v87_v28  ;;  %v90_v33 = vld [vmem:[%s2853_s0 + $0x1f8] sm:$0xff]  ;;  %v2292_v35 = vld [vmem:[%s2855_s2] ss:$0 sm:$0xff]  ;;  %v2015_v47 = vld [vmem:[%s2856_s5 + $0x8] sm:$0xff]  }
  0x18   :  { %v122_v34 = vpack.c.bf16 %v90_v33, %v89_v32 }
  0x19   :  { %1850 = vmatmul.mubr.msk.bf16.gmra.mrb[8].mxu1 %vm138_vm0, %v112_v49 }
  0x1a   :  { %1853 = vmatprep.mubr.msk.bf16.mxu1 %vm138_vm0, %v113_v50 }
  0x1e   :  { %1822 = vmatmul.mubr.msk.bf16.gmra.mrb[12].mxu0 %vm138_vm0, %v98_v45  ;;  %v2014_v45 = vld [vmem:[%s2856_s5] sm:$0xff]  }
  0x1f   :  { %1825 = vmatprep.mubr.msk.bf16.mxu0 %vm138_vm0, %v99_v48  ;;  %1941 = vmatprep.subr.bf16.mxu0 %v2014_v45 }
  0x20   :  { %1942 = vmatpush3.bf16.msra.mxu0 %v2014_v45 }
  0x21   :  { %1854 = vmatmul.mubr.msk.bf16.gmra.mrb[12].mxu1 %vm138_vm0, %v114_v61  ;;  %1943 = vmatprep.subr.bf16.mxu0 %v2015_v47 }
  0x22   :  { %1857 = vmatprep.mubr.msk.bf16.mxu1 %vm138_vm0, %v115_v62 }
  0x24   :  { %1944 = vmatpush3.bf16.msra.mxu0 %v2015_v47 }
  0x26   :  { %1826 = vmatmul.mubr.msk.bf16.gmra.mrb[16].mxu0 %vm138_vm0, %v100_v57 }
  0x27   :  { %1829 = vmatprep.mubr.msk.bf16.mxu0 %vm138_vm0, %v101_v60 }
  0x29   :  { %1858 = vmatmul.mubr.msk.bf16.gmra.mrb[16].mxu1 %vm138_vm0, %v116_v9 }
  0x2a   :  { %1861 = vmatprep.mubr.msk.bf16.mxu1 %vm138_vm0, %v117_v10 }
  0x2e   :  { %1830 = vmatmul.mubr.msk.bf16.gmra.mrb[20].mxu0 %vm138_vm0, %v102_v5 }
  0x2f   :  { %1833 = vmatprep.mubr.msk.bf16.mxu0 %vm138_vm0, %v103_v8 }
  0x31   :  { %1862 = vmatmul.mubr.msk.bf16.gmra.mrb[20].mxu1 %vm138_vm0, %v118_v21 }
  0x32   :  { %1865 = vmatprep.mubr.msk.bf16.mxu1 %vm138_vm0, %v119_v22 }
  0x36   :  { %1834 = vmatmul.mubr.msk.bf16.gmra.mrb[24].mxu0 %vm138_vm0, %v104_v17 }
  0x37   :  { %1837 = vmatprep.mubr.msk.bf16.mxu0 %vm138_vm0, %v105_v20 }
  0x39   :  { %1866 = vmatmul.mubr.msk.bf16.gmra.mrb[24].mxu1 %vm138_vm0, %v120_v30 }
  0x3a   :  { %1869 = vmatprep.mubr.msk.bf16.mxu1 %vm138_vm0, %v121_v31 }
  0x3e   :  { %1838 = vmatmul.mubr.msk.bf16.gmra.mrb[28].mxu0 %vm138_vm0, %v106_v27 }
  0x41   :  { %1870 = vmatmul.mubr.msk.bf16.gmra.mrb[28].mxu1 %vm138_vm0, %v122_v34 }
  0xd9   :  { %v1811_v36 = vpop.f32.mrb[0].mxu0 }
  0xda   :  { %v278_v37 = vadd.f32 %v1811_v36, %v2292_v35  ;;  %v269_v38 = vpop.f32.mrb[1].mxu0 }
  0xdb   :  { %v270_v39 = vadd.f32 %v2292_v35, %v269_v38  ;;  %v1812_v40 = vpop.f32.mrb[2].mxu0 }
  0xdc   :  { %v281_v41 = vadd.f32 %v1812_v40, %v2292_v35  ;;  %v272_v42 = vpop.f32.mrb[3].mxu0  ;;  %v526_v43 = vmax.f32 %v278_v37, 0.0  ;;  %v1843_v57 = vpop.f32.mrb[0].mxu1 }
  0xdd   :  { %v273_v44 = vadd.f32 %v2292_v35, %v272_v42  ;;  %v524_v48 = vmax.f32 %v270_v39, 0.0  ;;  %v406_v60 = vadd.f32 %v1843_v57, %v2292_v35  ;;  %v397_v61 = vpop.f32.mrb[1].mxu1 }
  0xde   :  { %v527_v46 = vmax.f32 %v281_v41, 0.0  ;;  %v398_v63 = vadd.f32 %v2292_v35, %v397_v61  ;;  %v1844_v0 = vpop.f32.mrb[2].mxu1 }
  0xdf   :  { %v525_v49 = vmax.f32 %v273_v44, 0.0  ;;  %v558_v3 = vmax.f32 %v406_v60, 0.0  ;;  %v409_v4 = vadd.f32 %v1844_v0, %v2292_v35  ;;  %v400_v5 = vpop.f32.mrb[3].mxu1 }
  0xe0   :  { %v589_v50 = vpack.c.bf16 %v527_v46, %v526_v43  ;;  %v556_v8 = vmax.f32 %v398_v63, 0.0  ;;  %v401_v9 = vadd.f32 %v2292_v35, %v400_v5 }
  0xe1   :  { %v588_v51 = vpack.c.bf16 %v525_v49, %v524_v48  ;;  %v1815_v52 = vpop.f32.mrb[4].mxu0  ;;  %v559_v11 = vmax.f32 %v409_v4, 0.0 }
  0xe2   :  { %v294_v53 = vadd.f32 %v1815_v52, %v2292_v35  ;;  %v285_v54 = vpop.f32.mrb[5].mxu0  ;;  %v557_v14 = vmax.f32 %v401_v9, 0.0 }
  0xe3   :  { %v286_v55 = vadd.f32 %v2292_v35, %v285_v54  ;;  %v1816_v56 = vpop.f32.mrb[6].mxu0  ;;  %1877 = vmatprep.mubr.msk.bf16.mxu1 %vm643_vm1, %v588_v51  ;;  %v2315_v17 = vpack.c.bf16 %v559_v11, %v558_v3 }
  0xe4   :  { %v297_v58 = vadd.f32 %v1816_v56, %v2292_v35  ;;  %v288_v59 = vpop.f32.mrb[7].mxu0  ;;  %1878 = vmatmul.mubr.msk.bf16.vlgmr.msra.gmra.mrb[32].mxu1 %vm643_vm1, %v589_v50  ;;  %v530_v1 = vmax.f32 %v294_v53, 0.0  ;;  %v2319_v20 = vpack.c.bf16 %v557_v14, %v556_v8  ;;  %v1847_v21 = vpop.f32.mrb[4].mxu1 }
  0xe5   :  { %v289_v62 = vadd.f32 %v2292_v35, %v288_v59  ;;  %v528_v6 = vmax.f32 %v286_v55, 0.0  ;;  %v422_v24 = vadd.f32 %v1847_v21, %v2292_v35  ;;  %v413_v25 = vpop.f32.mrb[5].mxu1 }
  0xe6   :  { %v531_v2 = vmax.f32 %v297_v58, 0.0  ;;  %v414_v27 = vadd.f32 %v2292_v35, %v413_v25  ;;  %v1848_v28 = vpop.f32.mrb[6].mxu1 }
  0xe7   :  { %v529_v7 = vmax.f32 %v289_v62, 0.0  ;;  %v562_v31 = vmax.f32 %v422_v24, 0.0  ;;  %v425_v32 = vadd.f32 %v1848_v28, %v2292_v35  ;;  %v416_v33 = vpop.f32.mrb[7].mxu1 }
  0xe8   :  { %v591_v10 = vpack.c.bf16 %v531_v2, %v530_v1  ;;  %v560_v37 = vmax.f32 %v414_v27, 0.0  ;;  %v417_v38 = vadd.f32 %v2292_v35, %v416_v33 }
  0xe9   :  { %v590_v12 = vpack.c.bf16 %v529_v7, %v528_v6  ;;  %v1819_v13 = vpop.f32.mrb[8].mxu0  ;;  %v563_v40 = vmax.f32 %v425_v32, 0.0 }
  0xea   :  { %v310_v15 = vadd.f32 %v1819_v13, %v2292_v35  ;;  %v301_v16 = vpop.f32.mrb[9].mxu0  ;;  %v561_v43 = vmax.f32 %v417_v38, 0.0 }
  0xeb   :  { %v302_v18 = vadd.f32 %v2292_v35, %v301_v16  ;;  %v1820_v19 = vpop.f32.mrb[10].mxu0  ;;  %1881 = vmatprep.mubr.msk.bf16.mxu1 %vm643_vm1, %v590_v12  ;;  %v2329_v46 = vpack.c.bf16 %v563_v40, %v562_v31 }
  0xec   :  { %v313_v22 = vadd.f32 %v1820_v19, %v2292_v35  ;;  %v304_v23 = vpop.f32.mrb[11].mxu0  ;;  %1882 = vmatmul.mubr.msk.bf16.gmra.mrb[36].mxu1 %vm643_vm1, %v591_v10  ;;  %v534_v29 = vmax.f32 %v310_v15, 0.0  ;;  %v2333_v49 = vpack.c.bf16 %v561_v43, %v560_v37  ;;  %v1851_v50 = vpop.f32.mrb[8].mxu1 }
  0xed   :  { %v305_v26 = vadd.f32 %v2292_v35, %v304_v23  ;;  %v532_v34 = vmax.f32 %v302_v18, 0.0  ;;  %v438_v53 = vadd.f32 %v1851_v50, %v2292_v35  ;;  %v429_v54 = vpop.f32.mrb[9].mxu1 }
  0xee   :  { %v535_v30 = vmax.f32 %v313_v22, 0.0  ;;  %v430_v56 = vadd.f32 %v2292_v35, %v429_v54  ;;  %v1852_v57 = vpop.f32.mrb[10].mxu1 }
  0xef   :  { %v533_v36 = vmax.f32 %v305_v26, 0.0  ;;  %v566_v60 = vmax.f32 %v438_v53, 0.0  ;;  %v441_v61 = vadd.f32 %v1852_v57, %v2292_v35  ;;  %v432_v62 = vpop.f32.mrb[11].mxu1 }
  0xf0   :  { %v593_v39 = vpack.c.bf16 %v535_v30, %v534_v29  ;;  %v564_v1 = vmax.f32 %v430_v56, 0.0  ;;  %v433_v2 = vadd.f32 %v2292_v35, %v432_v62 }
  0xf1   :  { %v592_v41 = vpack.c.bf16 %v533_v36, %v532_v34  ;;  %v1823_v42 = vpop.f32.mrb[12].mxu0  ;;  %v567_v4 = vmax.f32 %v441_v61, 0.0 }
  0xf2   :  { %v326_v44 = vadd.f32 %v1823_v42, %v2292_v35  ;;  %v317_v45 = vpop.f32.mrb[13].mxu0  ;;  %v565_v7 = vmax.f32 %v433_v2, 0.0 }
  0xf3   :  { %v318_v47 = vadd.f32 %v2292_v35, %v317_v45  ;;  %v1824_v48 = vpop.f32.mrb[14].mxu0  ;;  %1885 = vmatprep.mubr.msk.bf16.mxu1 %vm643_vm1, %v592_v41  ;;  %v2343_v10 = vpack.c.bf16 %v567_v4, %v566_v60 }
  0xf4   :  { %v329_v51 = vadd.f32 %v1824_v48, %v2292_v35  ;;  %v320_v52 = vpop.f32.mrb[15].mxu0  ;;  %1886 = vmatmul.mubr.msk.bf16.gmra.mrb[40].mxu1 %vm643_vm1, %v593_v39  ;;  %v538_v58 = vmax.f32 %v326_v44, 0.0  ;;  %v2347_v13 = vpack.c.bf16 %v565_v7, %v564_v1  ;;  %v1855_v14 = vpop.f32.mrb[12].mxu1 }
  0xf5   :  { %v321_v55 = vadd.f32 %v2292_v35, %v320_v52  ;;  %v536_v63 = vmax.f32 %v318_v47, 0.0  ;;  %v454_v18 = vadd.f32 %v1855_v14, %v2292_v35  ;;  %v445_v19 = vpop.f32.mrb[13].mxu1 }
  0xf6   :  { %v539_v59 = vmax.f32 %v329_v51, 0.0  ;;  %v446_v22 = vadd.f32 %v2292_v35, %v445_v19  ;;  %v1856_v23 = vpop.f32.mrb[14].mxu1 }
  0xf7   :  { %v537_v0 = vmax.f32 %v321_v55, 0.0  ;;  %v570_v26 = vmax.f32 %v454_v18, 0.0  ;;  %v457_v27 = vadd.f32 %v1856_v23, %v2292_v35  ;;  %v448_v28 = vpop.f32.mrb[15].mxu1 }
  0xf8   :  { %v595_v3 = vpack.c.bf16 %v539_v59, %v538_v58  ;;  %v568_v31 = vmax.f32 %v446_v22, 0.0  ;;  %v449_v32 = vadd.f32 %v2292_v35, %v448_v28 }
  0xf9   :  { %v594_v5 = vpack.c.bf16 %v537_v0, %v536_v63  ;;  %v1827_v6 = vpop.f32.mrb[16].mxu0  ;;  %v571_v34 = vmax.f32 %v457_v27, 0.0 }
  0xfa   :  { %v342_v8 = vadd.f32 %v1827_v6, %v2292_v35  ;;  %v333_v9 = vpop.f32.mrb[17].mxu0  ;;  %v569_v38 = vmax.f32 %v449_v32, 0.0 }
  0xfb   :  { %v334_v11 = vadd.f32 %v2292_v35, %v333_v9  ;;  %v1828_v12 = vpop.f32.mrb[18].mxu0  ;;  %1889 = vmatprep.mubr.msk.bf16.mxu1 %vm643_vm1, %v594_v5  ;;  %v2357_v41 = vpack.c.bf16 %v571_v34, %v570_v26 }
  0xfc   :  { %v345_v15 = vadd.f32 %v1828_v12, %v2292_v35  ;;  %v336_v16 = vpop.f32.mrb[19].mxu0  ;;  %1890 = vmatmul.mubr.msk.bf16.gmra.mrb[44].mxu1 %vm643_vm1, %v595_v3  ;;  %v542_v24 = vmax.f32 %v342_v8, 0.0  ;;  %v2361_v44 = vpack.c.bf16 %v569_v38, %v568_v31  ;;  %v1859_v45 = vpop.f32.mrb[16].mxu1 }
  0xfd   :  { %v337_v21 = vadd.f32 %v2292_v35, %v336_v16  ;;  %v540_v29 = vmax.f32 %v334_v11, 0.0  ;;  %v470_v50 = vadd.f32 %v1859_v45, %v2292_v35  ;;  %v461_v51 = vpop.f32.mrb[17].mxu1 }
  0xfe   :  { %v543_v25 = vmax.f32 %v345_v15, 0.0  ;;  %v462_v53 = vadd.f32 %v2292_v35, %v461_v51  ;;  %v1860_v54 = vpop.f32.mrb[18].mxu1 }
  0xff   :  { %v541_v30 = vmax.f32 %v337_v21, 0.0  ;;  %v574_v57 = vmax.f32 %v470_v50, 0.0  ;;  %v473_v58 = vadd.f32 %v1860_v54, %v2292_v35  ;;  %v464_v59 = vpop.f32.mrb[19].mxu1 }
 0x100   :  { %v597_v33 = vpack.c.bf16 %v543_v25, %v542_v24  ;;  %v572_v62 = vmax.f32 %v462_v53, 0.0  ;;  %v465_v63 = vadd.f32 %v2292_v35, %v464_v59 }
 0x101   :  { %v596_v36 = vpack.c.bf16 %v541_v30, %v540_v29  ;;  %v1831_v37 = vpop.f32.mrb[20].mxu0  ;;  %v575_v1 = vmax.f32 %v473_v58, 0.0 }
 0x102   :  { %v358_v39 = vadd.f32 %v1831_v37, %v2292_v35  ;;  %v349_v40 = vpop.f32.mrb[21].mxu0  ;;  %v573_v4 = vmax.f32 %v465_v63, 0.0 }
 0x103   :  { %v350_v42 = vadd.f32 %v2292_v35, %v349_v40  ;;  %v1832_v43 = vpop.f32.mrb[22].mxu0  ;;  %1893 = vmatprep.mubr.msk.bf16.mxu1 %vm643_vm1, %v596_v36  ;;  %v2371_v7 = vpack.c.bf16 %v575_v1, %v574_v57 }
 0x104   :  { %v361_v47 = vadd.f32 %v1832_v43, %v2292_v35  ;;  %v352_v48 = vpop.f32.mrb[23].mxu0  ;;  %1894 = vmatmul.mubr.msk.bf16.gmra.mrb[48].mxu1 %vm643_vm1, %v597_v33  ;;  %v546_v55 = vmax.f32 %v358_v39, 0.0  ;;  %v2375_v11 = vpack.c.bf16 %v573_v4, %v572_v62  ;;  %v1863_v12 = vpop.f32.mrb[20].mxu1 }
 0x105   :  { %v353_v52 = vadd.f32 %v2292_v35, %v352_v48  ;;  %v544_v60 = vmax.f32 %v350_v42, 0.0  ;;  %v486_v16 = vadd.f32 %v1863_v12, %v2292_v35  ;;  %v477_v18 = vpop.f32.mrb[21].mxu1 }
 0x106   :  { %v547_v56 = vmax.f32 %v361_v47, 0.0  ;;  %v478_v21 = vadd.f32 %v2292_v35, %v477_v18  ;;  %v1864_v22 = vpop.f32.mrb[22].mxu1 }
 0x107   :  { %v545_v61 = vmax.f32 %v353_v52, 0.0  ;;  %v578_v25 = vmax.f32 %v486_v16, 0.0  ;;  %v489_v26 = vadd.f32 %v1864_v22, %v2292_v35  ;;  %v480_v27 = vpop.f32.mrb[23].mxu1 }
 0x108   :  { %v599_v0 = vpack.c.bf16 %v547_v56, %v546_v55  ;;  %v576_v30 = vmax.f32 %v478_v21, 0.0  ;;  %v481_v31 = vadd.f32 %v2292_v35, %v480_v27 }
 0x109   :  { %v598_v2 = vpack.c.bf16 %v545_v61, %v544_v60  ;;  %v1835_v3 = vpop.f32.mrb[24].mxu0  ;;  %v579_v33 = vmax.f32 %v489_v26, 0.0 }
 0x10a   :  { %v374_v5 = vadd.f32 %v1835_v3, %v2292_v35  ;;  %v365_v6 = vpop.f32.mrb[25].mxu0  ;;  %v577_v37 = vmax.f32 %v481_v31, 0.0 }
 0x10b   :  { %v366_v8 = vadd.f32 %v2292_v35, %v365_v6  ;;  %v1836_v9 = vpop.f32.mrb[26].mxu0  ;;  %1897 = vmatprep.mubr.msk.bf16.mxu1 %vm643_vm1, %v598_v2  ;;  %v615_v40 = vpack.c.bf16 %v579_v33, %v578_v25 }
 0x10c   :  { %v377_v14 = vadd.f32 %v1836_v9, %v2292_v35  ;;  %v368_v15 = vpop.f32.mrb[27].mxu0  ;;  %1898 = vmatmul.mubr.msk.bf16.gmra.mrb[52].mxu1 %vm643_vm1, %v599_v0  ;;  %v550_v23 = vmax.f32 %v374_v5, 0.0  ;;  %v614_v45 = vpack.c.bf16 %v577_v37, %v576_v30  ;;  %v1867_v47 = vpop.f32.mrb[24].mxu1 }
 0x10d   :  { %v369_v19 = vadd.f32 %v2292_v35, %v368_v15  ;;  %v548_v28 = vmax.f32 %v366_v8, 0.0  ;;  %v502_v51 = vadd.f32 %v1867_v47, %v2292_v35  ;;  %v493_v52 = vpop.f32.mrb[25].mxu1 }
 0x10e   :  { %v551_v24 = vmax.f32 %v377_v14, 0.0  ;;  %v494_v54 = vadd.f32 %v2292_v35, %v493_v52  ;;  %v1868_v55 = vpop.f32.mrb[26].mxu1 }
 0x10f   :  { %v549_v29 = vmax.f32 %v369_v19, 0.0  ;;  %v582_v58 = vmax.f32 %v502_v51, 0.0  ;;  %v505_v59 = vadd.f32 %v1868_v55, %v2292_v35  ;;  %v496_v60 = vpop.f32.mrb[27].mxu1 }
 0x110   :  { %v601_v32 = vpack.c.bf16 %v551_v24, %v550_v23  ;;  %v580_v63 = vmax.f32 %v494_v54, 0.0  ;;  %v497_v0 = vadd.f32 %v2292_v35, %v496_v60 }
 0x111   :  { %v600_v34 = vpack.c.bf16 %v549_v29, %v548_v28  ;;  %v1839_v36 = vpop.f32.mrb[28].mxu0  ;;  %v583_v2 = vmax.f32 %v505_v59, 0.0 }
 0x112   :  { %v390_v38 = vadd.f32 %v1839_v36, %v2292_v35  ;;  %v381_v39 = vpop.f32.mrb[29].mxu0  ;;  %v581_v4 = vmax.f32 %v497_v0, 0.0 }
 0x113   :  { %v382_v42 = vadd.f32 %v2292_v35, %v381_v39  ;;  %v1840_v43 = vpop.f32.mrb[30].mxu0  ;;  %1901 = vmatprep.mubr.msk.bf16.mxu1 %vm643_vm1, %v600_v34  ;;  %v617_v5 = vpack.c.bf16 %v583_v2, %v582_v58 }
 0x114   :  { %v393_v48 = vadd.f32 %v1840_v43, %v2292_v35  ;;  %v384_v50 = vpop.f32.mrb[31].mxu0  ;;  %1902 = vmatmul.mubr.msk.bf16.gmra.mrb[56].mxu1 %vm643_vm1, %v601_v32  ;;  %v554_v56 = vmax.f32 %v390_v38, 0.0  ;;  %v616_v6 = vpack.c.bf16 %v581_v4, %v580_v63  ;;  %v1871_v8 = vpop.f32.mrb[28].mxu1 }
 0x115   :  { %v385_v53 = vadd.f32 %v2292_v35, %v384_v50  ;;  %v552_v61 = vmax.f32 %v382_v42, 0.0  ;;  %v518_v9 = vadd.f32 %v1871_v8, %v2292_v35  ;;  %v509_v12 = vpop.f32.mrb[29].mxu1 }
 0x116   :  { %v555_v57 = vmax.f32 %v393_v48, 0.0  ;;  %v510_v14 = vadd.f32 %v2292_v35, %v509_v12  ;;  %v1872_v15 = vpop.f32.mrb[30].mxu1 }
 0x117   :  { %v553_v62 = vmax.f32 %v385_v53, 0.0  ;;  %v586_v16 = vmax.f32 %v518_v9, 0.0  ;;  %v521_v18 = vadd.f32 %v1872_v15, %v2292_v35  ;;  %v512_v19 = vpop.f32.mrb[31].mxu1 }
 0x118   :  { %v603_v1 = vpack.c.bf16 %v555_v57, %v554_v56  ;;  %v584_v21 = vmax.f32 %v510_v14, 0.0  ;;  %v513_v22 = vadd.f32 %v2292_v35, %v512_v19  ;;  %v2429_v35 = vld [vmem:[%s2857_s4] ss:$0 sm:$0xff] }
 0x119   :  { %v602_v3 = vpack.c.bf16 %v553_v62, %v552_v61  ;;  %v587_v23 = vmax.f32 %v521_v18, 0.0 }
 0x11a   :  { %v585_v24 = vmax.f32 %v513_v22, 0.0 }
 0x11b   :  { %1905 = vmatprep.mubr.msk.bf16.mxu1 %vm643_vm1, %v602_v3  ;;  %v619_v25 = vpack.c.bf16 %v587_v23, %v586_v16 }
 0x11c   :  { %1906 = vmatmul.mubr.msk.bf16.gmra.mrb[60].mxu1 %vm643_vm1, %v603_v1  ;;  %v618_v26 = vpack.c.bf16 %v585_v24, %v584_v21 }
 0x11d   :  { %1909 = vmatprep.mubr.msk.bf16.mxu1 %vm643_vm1, %v2319_v20 }
 0x124   :  { %1910 = vmatmul.mubr.msk.bf16.gmra.mrb[64].mxu1 %vm643_vm1, %v2315_v17 }
 0x125   :  { %1913 = vmatprep.mubr.msk.bf16.mxu1 %vm643_vm1, %v2333_v49 }
 0x12c   :  { %1914 = vmatmul.mubr.msk.bf16.gmra.mrb[68].mxu1 %vm643_vm1, %v2329_v46 }
 0x12d   :  { %1917 = vmatprep.mubr.msk.bf16.mxu1 %vm643_vm1, %v2347_v13 }
 0x134   :  { %1918 = vmatmul.mubr.msk.bf16.gmra.mrb[72].mxu1 %vm643_vm1, %v2343_v10 }
 0x135   :  { %1921 = vmatprep.mubr.msk.bf16.mxu1 %vm643_vm1, %v2361_v44 }
 0x13c   :  { %1922 = vmatmul.mubr.msk.bf16.gmra.mrb[76].mxu1 %vm643_vm1, %v2357_v41 }
 0x13d   :  { %1925 = vmatprep.mubr.msk.bf16.mxu1 %vm643_vm1, %v2375_v11 }
 0x144   :  { %1926 = vmatmul.mubr.msk.bf16.gmra.mrb[80].mxu1 %vm643_vm1, %v2371_v7 }
 0x145   :  { %1929 = vmatprep.mubr.msk.bf16.mxu1 %vm643_vm1, %v614_v45 }
 0x14c   :  { %1930 = vmatmul.mubr.msk.bf16.gmra.mrb[84].mxu1 %vm643_vm1, %v615_v40 }
 0x14d   :  { %1933 = vmatprep.mubr.msk.bf16.mxu1 %vm643_vm1, %v616_v6 }
 0x154   :  { %1934 = vmatmul.mubr.msk.bf16.gmra.mrb[88].mxu1 %vm643_vm1, %v617_v5 }
 0x155   :  { %1937 = vmatprep.mubr.msk.bf16.mxu1 %vm643_vm1, %v618_v26 }
 0x15c   :  { %1938 = vmatmul.mubr.msk.bf16.gmra.mrb[92].mxu1 %vm643_vm1, %v619_v25 }
 0x1b7   :  { %v1879_v17 = vpop.f32.mrb[32].mxu1 }
 0x1b8   :  { %v783_v20 = vadd.f32 %v1879_v17, %v2429_v35  ;;  %v774_v46 = vpop.f32.mrb[33].mxu1 }
 0x1b9   :  { %v775_v49 = vadd.f32 %v2429_v35, %v774_v46  ;;  %v1880_v10 = vpop.f32.mrb[34].mxu1 }
 0x1ba   :  { %v786_v13 = vadd.f32 %v1880_v10, %v2429_v35  ;;  %v777_v41 = vpop.f32.mrb[35].mxu1  ;;  %v1031_v7 = vmax.f32 %v783_v20, 0.0 }
 0x1bb   :  { %v778_v44 = vadd.f32 %v2429_v35, %v777_v41  ;;  %v1029_v27 = vmax.f32 %v775_v49, 0.0 }
 0x1bc   :  { %v1032_v11 = vmax.f32 %v786_v13, 0.0 }
 0x1bd   :  { %v1030_v28 = vmax.f32 %v778_v44, 0.0 }
 0x1be   :  { %v1094_v29 = vpack.c.bf16 %v1032_v11, %v1031_v7 }
 0x1bf   :  { %v1093_v30 = vpack.c.bf16 %v1030_v28, %v1029_v27  ;;  %v1883_v31 = vpop.f32.mrb[36].mxu1 }
 0x1c0   :  { %v799_v32 = vadd.f32 %v1883_v31, %v2429_v35  ;;  %v790_v33 = vpop.f32.mrb[37].mxu1 }
 0x1c1   :  { %v791_v34 = vadd.f32 %v2429_v35, %v790_v33  ;;  %v1884_v36 = vpop.f32.mrb[38].mxu1  ;;  %1945 = vmatprep.mubr.msk.bf16.mxu0 %vm643_vm1, %v1093_v30 }
 0x1c2   :  { %v802_v37 = vadd.f32 %v1884_v36, %v2429_v35  ;;  %v793_v38 = vpop.f32.mrb[39].mxu1  ;;  %1946 = vmatmul.mubr.msk.bf16.vlgmr.msra.gmra.mrb[32].mxu0 %vm643_vm1, %v1094_v29  ;;  %v1035_v40 = vmax.f32 %v799_v32, 0.0 }
 0x1c3   :  { %v794_v39 = vadd.f32 %v2429_v35, %v793_v38  ;;  %v1033_v43 = vmax.f32 %v791_v34, 0.0 }
 0x1c4   :  { %v1036_v42 = vmax.f32 %v802_v37, 0.0 }
 0x1c5   :  { %v1034_v45 = vmax.f32 %v794_v39, 0.0 }
 0x1c6   :  { %v1096_v47 = vpack.c.bf16 %v1036_v42, %v1035_v40 }
 0x1c7   :  { %v1095_v48 = vpack.c.bf16 %v1034_v45, %v1033_v43  ;;  %v1887_v50 = vpop.f32.mrb[40].mxu1 }
 0x1c8   :  { %v815_v51 = vadd.f32 %v1887_v50, %v2429_v35  ;;  %v806_v52 = vpop.f32.mrb[41].mxu1 }
 0x1c9   :  { %v807_v53 = vadd.f32 %v2429_v35, %v806_v52  ;;  %v1888_v54 = vpop.f32.mrb[42].mxu1  ;;  %1949 = vmatprep.mubr.msk.bf16.mxu0 %vm643_vm1, %v1095_v48 }
 0x1ca   :  { %v818_v55 = vadd.f32 %v1888_v54, %v2429_v35  ;;  %v809_v56 = vpop.f32.mrb[43].mxu1  ;;  %1950 = vmatmul.mubr.msk.bf16.gmra.mrb[36].mxu0 %vm643_vm1, %v1096_v47  ;;  %v1039_v58 = vmax.f32 %v815_v51, 0.0 }
 0x1cb   :  { %v810_v57 = vadd.f32 %v2429_v35, %v809_v56  ;;  %v1037_v60 = vmax.f32 %v807_v53, 0.0 }
 0x1cc   :  { %v1040_v59 = vmax.f32 %v818_v55, 0.0 }
 0x1cd   :  { %v1038_v61 = vmax.f32 %v810_v57, 0.0 }
 0x1ce   :  { %v1098_v62 = vpack.c.bf16 %v1040_v59, %v1039_v58 }
 0x1cf   :  { %v1097_v63 = vpack.c.bf16 %v1038_v61, %v1037_v60  ;;  %v1891_v0 = vpop.f32.mrb[44].mxu1 }
 0x1d0   :  { %v831_v1 = vadd.f32 %v1891_v0, %v2429_v35  ;;  %v822_v2 = vpop.f32.mrb[45].mxu1 }
 0x1d1   :  { %v823_v3 = vadd.f32 %v2429_v35, %v822_v2  ;;  %v1892_v4 = vpop.f32.mrb[46].mxu1  ;;  %1953 = vmatprep.mubr.msk.bf16.mxu0 %vm643_vm1, %v1097_v63 }
 0x1d2   :  { %v834_v5 = vadd.f32 %v1892_v4, %v2429_v35  ;;  %v825_v6 = vpop.f32.mrb[47].mxu1  ;;  %1954 = vmatmul.mubr.msk.bf16.gmra.mrb[40].mxu0 %vm643_vm1, %v1098_v62  ;;  %v1043_v9 = vmax.f32 %v831_v1, 0.0 }
 0x1d3   :  { %v826_v8 = vadd.f32 %v2429_v35, %v825_v6  ;;  %v1041_v14 = vmax.f32 %v823_v3, 0.0 }
 0x1d4   :  { %v1044_v12 = vmax.f32 %v834_v5, 0.0 }
 0x1d5   :  { %v1042_v15 = vmax.f32 %v826_v8, 0.0 }
 0x1d6   :  { %v1100_v16 = vpack.c.bf16 %v1044_v12, %v1043_v9 }
 0x1d7   :  { %v1099_v18 = vpack.c.bf16 %v1042_v15, %v1041_v14  ;;  %v1895_v19 = vpop.f32.mrb[48].mxu1 }
 0x1d8   :  { %v847_v21 = vadd.f32 %v1895_v19, %v2429_v35  ;;  %v838_v22 = vpop.f32.mrb[49].mxu1 }
 0x1d9   :  { %v839_v23 = vadd.f32 %v2429_v35, %v838_v22  ;;  %v1896_v24 = vpop.f32.mrb[50].mxu1  ;;  %1957 = vmatprep.mubr.msk.bf16.mxu0 %vm643_vm1, %v1099_v18 }
 0x1da   :  { %v850_v25 = vadd.f32 %v1896_v24, %v2429_v35  ;;  %v841_v26 = vpop.f32.mrb[51].mxu1  ;;  %1958 = vmatmul.mubr.msk.bf16.gmra.mrb[44].mxu0 %vm643_vm1, %v1100_v16  ;;  %v1047_v20 = vmax.f32 %v847_v21, 0.0 }
 0x1db   :  { %v842_v17 = vadd.f32 %v2429_v35, %v841_v26  ;;  %v1045_v49 = vmax.f32 %v839_v23, 0.0 }
 0x1dc   :  { %v1048_v46 = vmax.f32 %v850_v25, 0.0 }
 0x1dd   :  { %v1046_v10 = vmax.f32 %v842_v17, 0.0 }
 0x1de   :  { %v1102_v13 = vpack.c.bf16 %v1048_v46, %v1047_v20 }
 0x1df   :  { %v1101_v41 = vpack.c.bf16 %v1046_v10, %v1045_v49  ;;  %v1899_v44 = vpop.f32.mrb[52].mxu1 }
 0x1e0   :  { %v863_v7 = vadd.f32 %v1899_v44, %v2429_v35  ;;  %v854_v11 = vpop.f32.mrb[53].mxu1 }
 0x1e1   :  { %v855_v27 = vadd.f32 %v2429_v35, %v854_v11  ;;  %v1900_v28 = vpop.f32.mrb[54].mxu1  ;;  %1961 = vmatprep.mubr.msk.bf16.mxu0 %vm643_vm1, %v1101_v41 }
 0x1e2   :  { %v866_v29 = vadd.f32 %v1900_v28, %v2429_v35  ;;  %v857_v30 = vpop.f32.mrb[55].mxu1  ;;  %1962 = vmatmul.mubr.msk.bf16.gmra.mrb[48].mxu0 %vm643_vm1, %v1102_v13  ;;  %v1051_v32 = vmax.f32 %v863_v7, 0.0 }
 0x1e3   :  { %v858_v31 = vadd.f32 %v2429_v35, %v857_v30  ;;  %v1049_v34 = vmax.f32 %v855_v27, 0.0 }
 0x1e4   :  { %v1052_v33 = vmax.f32 %v866_v29, 0.0 }
 0x1e5   :  { %v1050_v36 = vmax.f32 %v858_v31, 0.0 }
 0x1e6   :  { %v1104_v37 = vpack.c.bf16 %v1052_v33, %v1051_v32 }
 0x1e7   :  { %v1103_v38 = vpack.c.bf16 %v1050_v36, %v1049_v34  ;;  %v1903_v39 = vpop.f32.mrb[56].mxu1 }
 0x1e8   :  { %v879_v40 = vadd.f32 %v1903_v39, %v2429_v35  ;;  %v870_v42 = vpop.f32.mrb[57].mxu1 }
 0x1e9   :  { %v871_v43 = vadd.f32 %v2429_v35, %v870_v42  ;;  %v1904_v45 = vpop.f32.mrb[58].mxu1  ;;  %1965 = vmatprep.mubr.msk.bf16.mxu0 %vm643_vm1, %v1103_v38 }
 0x1ea   :  { %v882_v47 = vadd.f32 %v1904_v45, %v2429_v35  ;;  %v873_v48 = vpop.f32.mrb[59].mxu1  ;;  %1966 = vmatmul.mubr.msk.bf16.gmra.mrb[52].mxu0 %vm643_vm1, %v1104_v37  ;;  %v1055_v51 = vmax.f32 %v879_v40, 0.0 }
 0x1eb   :  { %v874_v50 = vadd.f32 %v2429_v35, %v873_v48  ;;  %v1053_v53 = vmax.f32 %v871_v43, 0.0 }
 0x1ec   :  { %v1056_v52 = vmax.f32 %v882_v47, 0.0 }
 0x1ed   :  { %v1054_v54 = vmax.f32 %v874_v50, 0.0 }
 0x1ee   :  { %v1106_v55 = vpack.c.bf16 %v1056_v52, %v1055_v51 }
 0x1ef   :  { %v1105_v56 = vpack.c.bf16 %v1054_v54, %v1053_v53  ;;  %v1907_v57 = vpop.f32.mrb[60].mxu1 }
 0x1f0   :  { %v895_v58 = vadd.f32 %v1907_v57, %v2429_v35  ;;  %v886_v59 = vpop.f32.mrb[61].mxu1 }
 0x1f1   :  { %v887_v60 = vadd.f32 %v2429_v35, %v886_v59  ;;  %v1908_v61 = vpop.f32.mrb[62].mxu1  ;;  %1969 = vmatprep.mubr.msk.bf16.mxu0 %vm643_vm1, %v1105_v56 }
 0x1f2   :  { %v898_v62 = vadd.f32 %v1908_v61, %v2429_v35  ;;  %v889_v63 = vpop.f32.mrb[63].mxu1  ;;  %1970 = vmatmul.mubr.msk.bf16.gmra.mrb[56].mxu0 %vm643_vm1, %v1106_v55  ;;  %v1059_v1 = vmax.f32 %v895_v58, 0.0 }
 0x1f3   :  { %v890_v0 = vadd.f32 %v2429_v35, %v889_v63  ;;  %v1057_v3 = vmax.f32 %v887_v60, 0.0 }
 0x1f4   :  { %v1060_v2 = vmax.f32 %v898_v62, 0.0 }
 0x1f5   :  { %v1058_v4 = vmax.f32 %v890_v0, 0.0 }
 0x1f6   :  { %v1108_v5 = vpack.c.bf16 %v1060_v2, %v1059_v1 }
 0x1f7   :  { %v1107_v6 = vpack.c.bf16 %v1058_v4, %v1057_v3  ;;  %v1911_v8 = vpop.f32.mrb[64].mxu1 }
 0x1f8   :  { %v911_v9 = vadd.f32 %v1911_v8, %v2429_v35  ;;  %v902_v12 = vpop.f32.mrb[65].mxu1 }
 0x1f9   :  { %v903_v14 = vadd.f32 %v2429_v35, %v902_v12  ;;  %v1912_v15 = vpop.f32.mrb[66].mxu1  ;;  %1973 = vmatprep.mubr.msk.bf16.mxu0 %vm643_vm1, %v1107_v6 }
 0x1fa   :  { %v914_v16 = vadd.f32 %v1912_v15, %v2429_v35  ;;  %v905_v18 = vpop.f32.mrb[67].mxu1  ;;  %1974 = vmatmul.mubr.msk.bf16.gmra.mrb[60].mxu0 %vm643_vm1, %v1108_v5  ;;  %v1063_v21 = vmax.f32 %v911_v9, 0.0 }
 0x1fb   :  { %v906_v19 = vadd.f32 %v2429_v35, %v905_v18  ;;  %v1061_v23 = vmax.f32 %v903_v14, 0.0 }
 0x1fc   :  { %v1064_v22 = vmax.f32 %v914_v16, 0.0 }
 0x1fd   :  { %v1062_v24 = vmax.f32 %v906_v19, 0.0 }
 0x1fe   :  { %v1110_v25 = vpack.c.bf16 %v1064_v22, %v1063_v21 }
 0x1ff   :  { %v1109_v26 = vpack.c.bf16 %v1062_v24, %v1061_v23  ;;  %v1915_v17 = vpop.f32.mrb[68].mxu1 }
 0x200   :  { %v927_v20 = vadd.f32 %v1915_v17, %v2429_v35  ;;  %v918_v46 = vpop.f32.mrb[69].mxu1 }
 0x201   :  { %v919_v49 = vadd.f32 %v2429_v35, %v918_v46  ;;  %v1916_v10 = vpop.f32.mrb[70].mxu1  ;;  %1977 = vmatprep.mubr.msk.bf16.mxu0 %vm643_vm1, %v1109_v26 }
 0x202   :  { %v930_v13 = vadd.f32 %v1916_v10, %v2429_v35  ;;  %v921_v41 = vpop.f32.mrb[71].mxu1  ;;  %1978 = vmatmul.mubr.msk.bf16.gmra.mrb[64].mxu0 %vm643_vm1, %v1110_v25  ;;  %v1067_v7 = vmax.f32 %v927_v20, 0.0 }
 0x203   :  { %v922_v44 = vadd.f32 %v2429_v35, %v921_v41  ;;  %v1065_v27 = vmax.f32 %v919_v49, 0.0 }
 0x204   :  { %v1068_v11 = vmax.f32 %v930_v13, 0.0 }
 0x205   :  { %v1066_v28 = vmax.f32 %v922_v44, 0.0 }
 0x206   :  { %v1112_v29 = vpack.c.bf16 %v1068_v11, %v1067_v7 }
 0x207   :  { %v1111_v30 = vpack.c.bf16 %v1066_v28, %v1065_v27  ;;  %v1919_v31 = vpop.f32.mrb[72].mxu1 }
 0x208   :  { %v943_v32 = vadd.f32 %v1919_v31, %v2429_v35  ;;  %v934_v33 = vpop.f32.mrb[73].mxu1 }
 0x209   :  { %v935_v34 = vadd.f32 %v2429_v35, %v934_v33  ;;  %v1920_v36 = vpop.f32.mrb[74].mxu1  ;;  %1981 = vmatprep.mubr.msk.bf16.mxu0 %vm643_vm1, %v1111_v30 }
 0x20a   :  { %v946_v37 = vadd.f32 %v1920_v36, %v2429_v35  ;;  %v937_v38 = vpop.f32.mrb[75].mxu1  ;;  %1982 = vmatmul.mubr.msk.bf16.gmra.mrb[68].mxu0 %vm643_vm1, %v1112_v29  ;;  %v1071_v40 = vmax.f32 %v943_v32, 0.0 }
 0x20b   :  { %v938_v39 = vadd.f32 %v2429_v35, %v937_v38  ;;  %v1069_v43 = vmax.f32 %v935_v34, 0.0 }
 0x20c   :  { %v1072_v42 = vmax.f32 %v946_v37, 0.0 }
 0x20d   :  { %v1070_v45 = vmax.f32 %v938_v39, 0.0 }
 0x20e   :  { %v1114_v47 = vpack.c.bf16 %v1072_v42, %v1071_v40 }
 0x20f   :  { %v1113_v48 = vpack.c.bf16 %v1070_v45, %v1069_v43  ;;  %v1923_v50 = vpop.f32.mrb[76].mxu1 }
 0x210   :  { %v959_v51 = vadd.f32 %v1923_v50, %v2429_v35  ;;  %v950_v52 = vpop.f32.mrb[77].mxu1 }
 0x211   :  { %v951_v53 = vadd.f32 %v2429_v35, %v950_v52  ;;  %v1924_v54 = vpop.f32.mrb[78].mxu1  ;;  %1985 = vmatprep.mubr.msk.bf16.mxu0 %vm643_vm1, %v1113_v48 }
 0x212   :  { %v962_v55 = vadd.f32 %v1924_v54, %v2429_v35  ;;  %v953_v56 = vpop.f32.mrb[79].mxu1  ;;  %1986 = vmatmul.mubr.msk.bf16.gmra.mrb[72].mxu0 %vm643_vm1, %v1114_v47  ;;  %v1075_v58 = vmax.f32 %v959_v51, 0.0 }
 0x213   :  { %v954_v57 = vadd.f32 %v2429_v35, %v953_v56  ;;  %v1073_v60 = vmax.f32 %v951_v53, 0.0 }
 0x214   :  { %v1076_v59 = vmax.f32 %v962_v55, 0.0 }
 0x215   :  { %v1074_v61 = vmax.f32 %v954_v57, 0.0  ;;  %v2530_v57 = vld [vmem:[%s2858_s6] ss:$0 sm:$0xff] }
 0x216   :  { %v1116_v62 = vpack.c.bf16 %v1076_v59, %v1075_v58 }
 0x217   :  { %v1115_v63 = vpack.c.bf16 %v1074_v61, %v1073_v60  ;;  %v1927_v0 = vpop.f32.mrb[80].mxu1 }
 0x218   :  { %v975_v1 = vadd.f32 %v1927_v0, %v2429_v35  ;;  %v966_v2 = vpop.f32.mrb[81].mxu1 }
 0x219   :  { %v967_v3 = vadd.f32 %v2429_v35, %v966_v2  ;;  %v1928_v4 = vpop.f32.mrb[82].mxu1  ;;  %1989 = vmatprep.mubr.msk.bf16.mxu0 %vm643_vm1, %v1115_v63 }
 0x21a   :  { %v978_v5 = vadd.f32 %v1928_v4, %v2429_v35  ;;  %v969_v6 = vpop.f32.mrb[83].mxu1  ;;  %1990 = vmatmul.mubr.msk.bf16.gmra.mrb[76].mxu0 %vm643_vm1, %v1116_v62  ;;  %v1079_v9 = vmax.f32 %v975_v1, 0.0 }
 0x21b   :  { %v970_v8 = vadd.f32 %v2429_v35, %v969_v6  ;;  %v1077_v14 = vmax.f32 %v967_v3, 0.0 }
 0x21c   :  { %v1080_v12 = vmax.f32 %v978_v5, 0.0 }
 0x21d   :  { %v1078_v15 = vmax.f32 %v970_v8, 0.0 }
 0x21e   :  { %v1118_v16 = vpack.c.bf16 %v1080_v12, %v1079_v9 }
 0x21f   :  { %v1117_v18 = vpack.c.bf16 %v1078_v15, %v1077_v14  ;;  %v1931_v19 = vpop.f32.mrb[84].mxu1 }
 0x220   :  { %v991_v21 = vadd.f32 %v1931_v19, %v2429_v35  ;;  %v982_v22 = vpop.f32.mrb[85].mxu1 }
 0x221   :  { %v983_v23 = vadd.f32 %v2429_v35, %v982_v22  ;;  %v1932_v24 = vpop.f32.mrb[86].mxu1  ;;  %1993 = vmatprep.mubr.msk.bf16.mxu0 %vm643_vm1, %v1117_v18 }
 0x222   :  { %v994_v25 = vadd.f32 %v1932_v24, %v2429_v35  ;;  %v985_v26 = vpop.f32.mrb[87].mxu1  ;;  %1994 = vmatmul.mubr.msk.bf16.gmra.mrb[80].mxu0 %vm643_vm1, %v1118_v16  ;;  %v1083_v20 = vmax.f32 %v991_v21, 0.0 }
 0x223   :  { %v986_v17 = vadd.f32 %v2429_v35, %v985_v26  ;;  %v1081_v49 = vmax.f32 %v983_v23, 0.0 }
 0x224   :  { %v1084_v46 = vmax.f32 %v994_v25, 0.0 }
 0x225   :  { %v1082_v10 = vmax.f32 %v986_v17, 0.0 }
 0x226   :  { %v1120_v13 = vpack.c.bf16 %v1084_v46, %v1083_v20 }
 0x227   :  { %v1119_v41 = vpack.c.bf16 %v1082_v10, %v1081_v49  ;;  %v1935_v44 = vpop.f32.mrb[88].mxu1 }
 0x228   :  { %v1007_v7 = vadd.f32 %v1935_v44, %v2429_v35  ;;  %v998_v11 = vpop.f32.mrb[89].mxu1 }
 0x229   :  { %v999_v27 = vadd.f32 %v2429_v35, %v998_v11  ;;  %v1936_v28 = vpop.f32.mrb[90].mxu1  ;;  %1997 = vmatprep.mubr.msk.bf16.mxu0 %vm643_vm1, %v1119_v41 }
 0x22a   :  { %v1010_v29 = vadd.f32 %v1936_v28, %v2429_v35  ;;  %v1001_v30 = vpop.f32.mrb[91].mxu1  ;;  %1998 = vmatmul.mubr.msk.bf16.gmra.mrb[84].mxu0 %vm643_vm1, %v1120_v13  ;;  %v1087_v32 = vmax.f32 %v1007_v7, 0.0 }
 0x22b   :  { %v1002_v31 = vadd.f32 %v2429_v35, %v1001_v30  ;;  %v1085_v34 = vmax.f32 %v999_v27, 0.0 }
 0x22c   :  { %v1088_v33 = vmax.f32 %v1010_v29, 0.0 }
 0x22d   :  { %v1086_v36 = vmax.f32 %v1002_v31, 0.0 }
 0x22e   :  { %v1122_v37 = vpack.c.bf16 %v1088_v33, %v1087_v32 }
 0x22f   :  { %v1121_v38 = vpack.c.bf16 %v1086_v36, %v1085_v34  ;;  %v1939_v39 = vpop.f32.mrb[92].mxu1 }
 0x230   :  { %v1023_v40 = vadd.f32 %v1939_v39, %v2429_v35  ;;  %v1014_v42 = vpop.f32.mrb[93].mxu1 }
 0x231   :  { %v1015_v43 = vadd.f32 %v2429_v35, %v1014_v42  ;;  %v1940_v45 = vpop.f32.mrb[94].mxu1  ;;  %2001 = vmatprep.mubr.msk.bf16.mxu0 %vm643_vm1, %v1121_v38 }
 0x232   :  { %v1026_v47 = vadd.f32 %v1940_v45, %v2429_v35  ;;  %v1017_v48 = vpop.f32.mrb[95].mxu1  ;;  %2002 = vmatmul.mubr.msk.bf16.gmra.mrb[88].mxu0 %vm643_vm1, %v1122_v37  ;;  %v1091_v51 = vmax.f32 %v1023_v40, 0.0 }
 0x233   :  { %v1018_v50 = vadd.f32 %v2429_v35, %v1017_v48  ;;  %v1089_v53 = vmax.f32 %v1015_v43, 0.0 }
 0x234   :  { %v1092_v52 = vmax.f32 %v1026_v47, 0.0 }
 0x235   :  { %v1090_v54 = vmax.f32 %v1018_v50, 0.0 }
 0x236   :  { %v1124_v55 = vpack.c.bf16 %v1092_v52, %v1091_v51 }
 0x237   :  { %v1123_v56 = vpack.c.bf16 %v1090_v54, %v1089_v53 }
 0x239   :  { %2005 = vmatprep.mubr.msk.bf16.mxu0 %vm643_vm1, %v1123_v56 }
 0x23a   :  { %2006 = vmatmul.mubr.msk.bf16.gmra.mrb[92].mxu0 %vm643_vm1, %v1124_v55 }
 0x295   :  { %v1947_v58 = vpop.f32.mrb[32].mxu0 }
 0x296   :  { %v1287_v59 = vadd.f32 %v1947_v58, %v2530_v57  ;;  %v1278_v35 = vpop.f32.mrb[33].mxu0 }
 0x297   :  { %v1279_v60 = vadd.f32 %v2530_v57, %v1278_v35  ;;  %v1948_v61 = vpop.f32.mrb[34].mxu0 }
 0x298   :  { %1536 = vst.msk [vmem:[%s2859_s7 + $0x10] sm:$0xff] %vm1533_vm2, %v1287_v59  ;;  %v1290_v62 = vadd.f32 %v1948_v61, %v2530_v57  ;;  %v1281_v63 = vpop.f32.mrb[35].mxu0 }
 0x299   :  { %1534 = vst.msk [vmem:[%s2859_s7] sm:$0xff] %vm1533_vm2, %v1279_v60  ;;  %v1282_v0 = vadd.f32 %v2530_v57, %v1281_v63 }
 0x29a   :  { %1537 = vst.msk [vmem:[%s2859_s7 + $0x18] sm:$0xff] %vm1533_vm2, %v1290_v62 }
 0x29b   :  { %1535 = vst.msk [vmem:[%s2859_s7 + $0x8] sm:$0xff] %vm1533_vm2, %v1282_v0 }
 0x29d   :  { %v1951_v1 = vpop.f32.mrb[36].mxu0 }
 0x29e   :  { %v1303_v2 = vadd.f32 %v1951_v1, %v2530_v57  ;;  %v1294_v3 = vpop.f32.mrb[37].mxu0 }
 0x29f   :  { %v1295_v4 = vadd.f32 %v2530_v57, %v1294_v3  ;;  %v1952_v5 = vpop.f32.mrb[38].mxu0 }
 0x2a0   :  { %1540 = vst.msk [vmem:[%s2859_s7 + $0x30] sm:$0xff] %vm1533_vm2, %v1303_v2  ;;  %v1306_v6 = vadd.f32 %v1952_v5, %v2530_v57  ;;  %v1297_v8 = vpop.f32.mrb[39].mxu0 }
 0x2a1   :  { %1538 = vst.msk [vmem:[%s2859_s7 + $0x20] sm:$0xff] %vm1533_vm2, %v1295_v4  ;;  %v1298_v9 = vadd.f32 %v2530_v57, %v1297_v8 }
 0x2a2   :  { %1541 = vst.msk [vmem:[%s2859_s7 + $0x38] sm:$0xff] %vm1533_vm2, %v1306_v6 }
 0x2a3   :  { %1539 = vst.msk [vmem:[%s2859_s7 + $0x28] sm:$0xff] %vm1533_vm2, %v1298_v9 }
 0x2a5   :  { %v1955_v12 = vpop.f32.mrb[40].mxu0 }
 0x2a6   :  { %v1319_v14 = vadd.f32 %v1955_v12, %v2530_v57  ;;  %v1310_v15 = vpop.f32.mrb[41].mxu0 }
 0x2a7   :  { %v1311_v16 = vadd.f32 %v2530_v57, %v1310_v15  ;;  %v1956_v18 = vpop.f32.mrb[42].mxu0 }
 0x2a8   :  { %1544 = vst.msk [vmem:[%s2859_s7 + $0x50] sm:$0xff] %vm1533_vm2, %v1319_v14  ;;  %v1322_v19 = vadd.f32 %v1956_v18, %v2530_v57  ;;  %v1313_v21 = vpop.f32.mrb[43].mxu0 }
 0x2a9   :  { %1542 = vst.msk [vmem:[%s2859_s7 + $0x40] sm:$0xff] %vm1533_vm2, %v1311_v16  ;;  %v1314_v22 = vadd.f32 %v2530_v57, %v1313_v21 }
 0x2aa   :  { %1545 = vst.msk [vmem:[%s2859_s7 + $0x58] sm:$0xff] %vm1533_vm2, %v1322_v19 }
 0x2ab   :  { %1543 = vst.msk [vmem:[%s2859_s7 + $0x48] sm:$0xff] %vm1533_vm2, %v1314_v22 }
 0x2ad   :  { %v1959_v23 = vpop.f32.mrb[44].mxu0 }
 0x2ae   :  { %v1335_v24 = vadd.f32 %v1959_v23, %v2530_v57  ;;  %v1326_v25 = vpop.f32.mrb[45].mxu0 }
 0x2af   :  { %v1327_v26 = vadd.f32 %v2530_v57, %v1326_v25  ;;  %v1960_v17 = vpop.f32.mrb[46].mxu0 }
 0x2b0   :  { %1548 = vst.msk [vmem:[%s2859_s7 + $0x70] sm:$0xff] %vm1533_vm2, %v1335_v24  ;;  %v1338_v20 = vadd.f32 %v1960_v17, %v2530_v57  ;;  %v1329_v46 = vpop.f32.mrb[47].mxu0 }
 0x2b1   :  { %1546 = vst.msk [vmem:[%s2859_s7 + $0x60] sm:$0xff] %vm1533_vm2, %v1327_v26  ;;  %v1330_v49 = vadd.f32 %v2530_v57, %v1329_v46 }
 0x2b2   :  { %1549 = vst.msk [vmem:[%s2859_s7 + $0x78] sm:$0xff] %vm1533_vm2, %v1338_v20 }
 0x2b3   :  { %1547 = vst.msk [vmem:[%s2859_s7 + $0x68] sm:$0xff] %vm1533_vm2, %v1330_v49 }
 0x2b5   :  { %v1963_v10 = vpop.f32.mrb[48].mxu0 }
 0x2b6   :  { %v1351_v13 = vadd.f32 %v1963_v10, %v2530_v57  ;;  %v1342_v41 = vpop.f32.mrb[49].mxu0 }
 0x2b7   :  { %v1343_v44 = vadd.f32 %v2530_v57, %v1342_v41  ;;  %v1964_v7 = vpop.f32.mrb[50].mxu0 }
 0x2b8   :  { %1552 = vst.msk [vmem:[%s2859_s7 + $0x90] sm:$0xff] %vm1533_vm2, %v1351_v13  ;;  %v1354_v11 = vadd.f32 %v1964_v7, %v2530_v57  ;;  %v1345_v27 = vpop.f32.mrb[51].mxu0 }
 0x2b9   :  { %1550 = vst.msk [vmem:[%s2859_s7 + $0x80] sm:$0xff] %vm1533_vm2, %v1343_v44  ;;  %v1346_v28 = vadd.f32 %v2530_v57, %v1345_v27 }
 0x2ba   :  { %1553 = vst.msk [vmem:[%s2859_s7 + $0x98] sm:$0xff] %vm1533_vm2, %v1354_v11 }
 0x2bb   :  { %1551 = vst.msk [vmem:[%s2859_s7 + $0x88] sm:$0xff] %vm1533_vm2, %v1346_v28 }
 0x2bd   :  { %v1967_v29 = vpop.f32.mrb[52].mxu0 }
 0x2be   :  { %v1367_v30 = vadd.f32 %v1967_v29, %v2530_v57  ;;  %v1358_v31 = vpop.f32.mrb[53].mxu0 }
 0x2bf   :  { %v1359_v32 = vadd.f32 %v2530_v57, %v1358_v31  ;;  %v1968_v33 = vpop.f32.mrb[54].mxu0 }
 0x2c0   :  { %1556 = vst.msk [vmem:[%s2859_s7 + $0xb0] sm:$0xff] %vm1533_vm2, %v1367_v30  ;;  %v1370_v34 = vadd.f32 %v1968_v33, %v2530_v57  ;;  %v1361_v36 = vpop.f32.mrb[55].mxu0 }
 0x2c1   :  { %1554 = vst.msk [vmem:[%s2859_s7 + $0xa0] sm:$0xff] %vm1533_vm2, %v1359_v32  ;;  %v1362_v37 = vadd.f32 %v2530_v57, %v1361_v36 }
 0x2c2   :  { %1557 = vst.msk [vmem:[%s2859_s7 + $0xb8] sm:$0xff] %vm1533_vm2, %v1370_v34 }
 0x2c3   :  { %1555 = vst.msk [vmem:[%s2859_s7 + $0xa8] sm:$0xff] %vm1533_vm2, %v1362_v37 }
 0x2c5   :  { %v1971_v38 = vpop.f32.mrb[56].mxu0 }
 0x2c6   :  { %v1383_v39 = vadd.f32 %v1971_v38, %v2530_v57  ;;  %v1374_v40 = vpop.f32.mrb[57].mxu0 }
 0x2c7   :  { %v1375_v42 = vadd.f32 %v2530_v57, %v1374_v40  ;;  %v1972_v43 = vpop.f32.mrb[58].mxu0 }
 0x2c8   :  { %1560 = vst.msk [vmem:[%s2859_s7 + $0xd0] sm:$0xff] %vm1533_vm2, %v1383_v39  ;;  %v1386_v45 = vadd.f32 %v1972_v43, %v2530_v57  ;;  %v1377_v47 = vpop.f32.mrb[59].mxu0 }
 0x2c9   :  { %1558 = vst.msk [vmem:[%s2859_s7 + $0xc0] sm:$0xff] %vm1533_vm2, %v1375_v42  ;;  %v1378_v48 = vadd.f32 %v2530_v57, %v1377_v47 }
 0x2ca   :  { %1561 = vst.msk [vmem:[%s2859_s7 + $0xd8] sm:$0xff] %vm1533_vm2, %v1386_v45 }
 0x2cb   :  { %1559 = vst.msk [vmem:[%s2859_s7 + $0xc8] sm:$0xff] %vm1533_vm2, %v1378_v48 }
 0x2cd   :  { %v1975_v50 = vpop.f32.mrb[60].mxu0 }
 0x2ce   :  { %v1399_v51 = vadd.f32 %v1975_v50, %v2530_v57  ;;  %v1390_v52 = vpop.f32.mrb[61].mxu0 }
 0x2cf   :  { %v1391_v53 = vadd.f32 %v2530_v57, %v1390_v52  ;;  %v1976_v54 = vpop.f32.mrb[62].mxu0 }
 0x2d0   :  { %1564 = vst.msk [vmem:[%s2859_s7 + $0xf0] sm:$0xff] %vm1533_vm2, %v1399_v51  ;;  %v1402_v55 = vadd.f32 %v1976_v54, %v2530_v57  ;;  %v1393_v56 = vpop.f32.mrb[63].mxu0 }
 0x2d1   :  { %1562 = vst.msk [vmem:[%s2859_s7 + $0xe0] sm:$0xff] %vm1533_vm2, %v1391_v53  ;;  %v1394_v58 = vadd.f32 %v2530_v57, %v1393_v56 }
 0x2d2   :  { %1565 = vst.msk [vmem:[%s2859_s7 + $0xf8] sm:$0xff] %vm1533_vm2, %v1402_v55 }
 0x2d3   :  { %1563 = vst.msk [vmem:[%s2859_s7 + $0xe8] sm:$0xff] %vm1533_vm2, %v1394_v58 }
 0x2d5   :  { %v1979_v59 = vpop.f32.mrb[64].mxu0 }
 0x2d6   :  { %v1415_v35 = vadd.f32 %v1979_v59, %v2530_v57  ;;  %v1406_v60 = vpop.f32.mrb[65].mxu0 }
 0x2d7   :  { %v1407_v61 = vadd.f32 %v2530_v57, %v1406_v60  ;;  %v1980_v62 = vpop.f32.mrb[66].mxu0 }
 0x2d8   :  { %1568 = vst.msk [vmem:[%s2859_s7 + $0x110] sm:$0xff] %vm1533_vm2, %v1415_v35  ;;  %v1418_v63 = vadd.f32 %v1980_v62, %v2530_v57  ;;  %v1409_v0 = vpop.f32.mrb[67].mxu0 }
 0x2d9   :  { %1566 = vst.msk [vmem:[%s2859_s7 + $0x100] sm:$0xff] %vm1533_vm2, %v1407_v61  ;;  %v1410_v1 = vadd.f32 %v2530_v57, %v1409_v0 }
 0x2da   :  { %1569 = vst.msk [vmem:[%s2859_s7 + $0x118] sm:$0xff] %vm1533_vm2, %v1418_v63 }
 0x2db   :  { %1567 = vst.msk [vmem:[%s2859_s7 + $0x108] sm:$0xff] %vm1533_vm2, %v1410_v1 }
 0x2dd   :  { %v1983_v2 = vpop.f32.mrb[68].mxu0 }
 0x2de   :  { %v1431_v3 = vadd.f32 %v1983_v2, %v2530_v57  ;;  %v1422_v4 = vpop.f32.mrb[69].mxu0 }
 0x2df   :  { %v1423_v5 = vadd.f32 %v2530_v57, %v1422_v4  ;;  %v1984_v6 = vpop.f32.mrb[70].mxu0 }
 0x2e0   :  { %1572 = vst.msk [vmem:[%s2859_s7 + $0x130] sm:$0xff] %vm1533_vm2, %v1431_v3  ;;  %v1434_v8 = vadd.f32 %v1984_v6, %v2530_v57  ;;  %v1425_v9 = vpop.f32.mrb[71].mxu0 }
 0x2e1   :  { %1570 = vst.msk [vmem:[%s2859_s7 + $0x120] sm:$0xff] %vm1533_vm2, %v1423_v5  ;;  %v1426_v12 = vadd.f32 %v2530_v57, %v1425_v9 }
 0x2e2   :  { %1573 = vst.msk [vmem:[%s2859_s7 + $0x138] sm:$0xff] %vm1533_vm2, %v1434_v8 }
 0x2e3   :  { %1571 = vst.msk [vmem:[%s2859_s7 + $0x128] sm:$0xff] %vm1533_vm2, %v1426_v12 }
 0x2e5   :  { %v1987_v14 = vpop.f32.mrb[72].mxu0 }
 0x2e6   :  { %v1447_v15 = vadd.f32 %v1987_v14, %v2530_v57  ;;  %v1438_v16 = vpop.f32.mrb[73].mxu0 }
 0x2e7   :  { %v1439_v18 = vadd.f32 %v2530_v57, %v1438_v16  ;;  %v1988_v19 = vpop.f32.mrb[74].mxu0 }
 0x2e8   :  { %1576 = vst.msk [vmem:[%s2859_s7 + $0x150] sm:$0xff] %vm1533_vm2, %v1447_v15  ;;  %v1450_v21 = vadd.f32 %v1988_v19, %v2530_v57  ;;  %v1441_v22 = vpop.f32.mrb[75].mxu0 }
 0x2e9   :  { %1574 = vst.msk [vmem:[%s2859_s7 + $0x140] sm:$0xff] %vm1533_vm2, %v1439_v18  ;;  %v1442_v23 = vadd.f32 %v2530_v57, %v1441_v22 }
 0x2ea   :  { %1577 = vst.msk [vmem:[%s2859_s7 + $0x158] sm:$0xff] %vm1533_vm2, %v1450_v21 }
 0x2eb   :  { %1575 = vst.msk [vmem:[%s2859_s7 + $0x148] sm:$0xff] %vm1533_vm2, %v1442_v23 }
 0x2ed   :  { %v1991_v24 = vpop.f32.mrb[76].mxu0 }
 0x2ee   :  { %v1463_v25 = vadd.f32 %v1991_v24, %v2530_v57  ;;  %v1454_v26 = vpop.f32.mrb[77].mxu0 }
 0x2ef   :  { %v1455_v17 = vadd.f32 %v2530_v57, %v1454_v26  ;;  %v1992_v20 = vpop.f32.mrb[78].mxu0 }
 0x2f0   :  { %1580 = vst.msk [vmem:[%s2859_s7 + $0x170] sm:$0xff] %vm1533_vm2, %v1463_v25  ;;  %v1466_v46 = vadd.f32 %v1992_v20, %v2530_v57  ;;  %v1457_v49 = vpop.f32.mrb[79].mxu0 }
 0x2f1   :  { %1578 = vst.msk [vmem:[%s2859_s7 + $0x160] sm:$0xff] %vm1533_vm2, %v1455_v17  ;;  %v1458_v10 = vadd.f32 %v2530_v57, %v1457_v49 }
 0x2f2   :  { %1581 = vst.msk [vmem:[%s2859_s7 + $0x178] sm:$0xff] %vm1533_vm2, %v1466_v46 }
 0x2f3   :  { %1579 = vst.msk [vmem:[%s2859_s7 + $0x168] sm:$0xff] %vm1533_vm2, %v1458_v10 }
 0x2f5   :  { %v1995_v13 = vpop.f32.mrb[80].mxu0 }
 0x2f6   :  { %v1479_v41 = vadd.f32 %v1995_v13, %v2530_v57  ;;  %v1470_v44 = vpop.f32.mrb[81].mxu0 }
 0x2f7   :  { %v1471_v7 = vadd.f32 %v2530_v57, %v1470_v44  ;;  %v1996_v11 = vpop.f32.mrb[82].mxu0 }
 0x2f8   :  { %1584 = vst.msk [vmem:[%s2859_s7 + $0x190] sm:$0xff] %vm1533_vm2, %v1479_v41  ;;  %v1482_v27 = vadd.f32 %v1996_v11, %v2530_v57  ;;  %v1473_v28 = vpop.f32.mrb[83].mxu0 }
 0x2f9   :  { %1582 = vst.msk [vmem:[%s2859_s7 + $0x180] sm:$0xff] %vm1533_vm2, %v1471_v7  ;;  %v1474_v29 = vadd.f32 %v2530_v57, %v1473_v28 }
 0x2fa   :  { %1585 = vst.msk [vmem:[%s2859_s7 + $0x198] sm:$0xff] %vm1533_vm2, %v1482_v27 }
 0x2fb   :  { %1583 = vst.msk [vmem:[%s2859_s7 + $0x188] sm:$0xff] %vm1533_vm2, %v1474_v29 }
 0x2fd   :  { %v1999_v30 = vpop.f32.mrb[84].mxu0 }
 0x2fe   :  { %v1495_v31 = vadd.f32 %v1999_v30, %v2530_v57  ;;  %v1486_v32 = vpop.f32.mrb[85].mxu0 }
 0x2ff   :  { %v1487_v33 = vadd.f32 %v2530_v57, %v1486_v32  ;;  %v2000_v34 = vpop.f32.mrb[86].mxu0 }
 0x300   :  { %1588 = vst.msk [vmem:[%s2859_s7 + $0x1b0] sm:$0xff] %vm1533_vm2, %v1495_v31  ;;  %v1498_v36 = vadd.f32 %v2000_v34, %v2530_v57  ;;  %v1489_v37 = vpop.f32.mrb[87].mxu0 }
 0x301   :  { %1586 = vst.msk [vmem:[%s2859_s7 + $0x1a0] sm:$0xff] %vm1533_vm2, %v1487_v33  ;;  %v1490_v38 = vadd.f32 %v2530_v57, %v1489_v37 }
 0x302   :  { %1589 = vst.msk [vmem:[%s2859_s7 + $0x1b8] sm:$0xff] %vm1533_vm2, %v1498_v36 }
 0x303   :  { %1587 = vst.msk [vmem:[%s2859_s7 + $0x1a8] sm:$0xff] %vm1533_vm2, %v1490_v38 }
 0x305   :  { %v2003_v39 = vpop.f32.mrb[88].mxu0 }
 0x306   :  { %v1511_v40 = vadd.f32 %v2003_v39, %v2530_v57  ;;  %v1502_v42 = vpop.f32.mrb[89].mxu0 }
 0x307   :  { %v1503_v43 = vadd.f32 %v2530_v57, %v1502_v42  ;;  %v2004_v45 = vpop.f32.mrb[90].mxu0 }
 0x308   :  { %1592 = vst.msk [vmem:[%s2859_s7 + $0x1d0] sm:$0xff] %vm1533_vm2, %v1511_v40  ;;  %v1514_v47 = vadd.f32 %v2004_v45, %v2530_v57  ;;  %v1505_v48 = vpop.f32.mrb[91].mxu0 }
 0x309   :  { %1590 = vst.msk [vmem:[%s2859_s7 + $0x1c0] sm:$0xff] %vm1533_vm2, %v1503_v43  ;;  %v1506_v50 = vadd.f32 %v2530_v57, %v1505_v48 }
 0x30a   :  { %1593 = vst.msk [vmem:[%s2859_s7 + $0x1d8] sm:$0xff] %vm1533_vm2, %v1514_v47 }
 0x30b   :  { %1591 = vst.msk [vmem:[%s2859_s7 + $0x1c8] sm:$0xff] %vm1533_vm2, %v1506_v50 }
 0x30d   :  { %v2007_v51 = vpop.f32.mrb[92].mxu0 }
 0x30e   :  { %v1527_v52 = vadd.f32 %v2007_v51, %v2530_v57  ;;  %v1518_v53 = vpop.f32.mrb[93].mxu0 }
 0x30f   :  { %v1519_v54 = vadd.f32 %v2530_v57, %v1518_v53  ;;  %v2008_v55 = vpop.f32.mrb[94].mxu0 }
 0x310   :  { %1596 = vst.msk [vmem:[%s2859_s7 + $0x1f0] sm:$0xff] %vm1533_vm2, %v1527_v52  ;;  %v1530_v56 = vadd.f32 %v2008_v55, %v2530_v57  ;;  %v1521_v58 = vpop.f32.mrb[95].mxu0 }
 0x311   :  { %1594 = vst.msk [vmem:[%s2859_s7 + $0x1e0] sm:$0xff] %vm1533_vm2, %v1519_v54  ;;  %v1522_v59 = vadd.f32 %v2530_v57, %v1521_v58 }
 0x312   :  { %1597 = vst.msk [vmem:[%s2859_s7 + $0x1f8] sm:$0xff] %vm1533_vm2, %v1530_v56 }
 0x313   :  { %1595 = vst.msk [vmem:[%s2859_s7 + $0x1e8] sm:$0xff] %vm1533_vm2, %v1522_v59 }

</bundles_post_ra>
